<compile_context>
chip_gen: v6e
topology: v6e:2x2x1
jax: 0.10.0
libtpu: 0.0.40
codegen_flags: <defaults>
</compile_context>

<pallas_src>
import jax
import jax.numpy as jnp
from jax import lax
from jax.experimental import pallas as pl
from jax.experimental.pallas import tpu as pltpu

C_OUT = 5   # Conv3d out_channels
K = 5       # Conv3d kernel size (5x5x5), in_channels = 1


def _build_toeplitz_weights(conv_w, H, W, howo_pad):
    """(C_OUT, 1, K, K, K) conv weights -> (K, H*W, C_OUT*howo_pad) matrices.

    T[kd, h*W + w, co*howo_pad + ho*Wo + wo] = conv_w[co, 0, kd, h-ho, w-wo]
    whenever 0 <= h-ho < K and 0 <= w-wo < K, else 0; columns >= Ho*Wo inside
    each channel block are zero padding so every per-(co, do) output block is a
    multiple of 128 lanes.  A matmul of an (H*W,)-row of one input depth plane
    with T[kd] performs the full (kh, kw) contraction for every output channel
    and every output (ho, wo) at once.
    """
    Ho, Wo = H - K + 1, W - K + 1
    wsq = conv_w.reshape(C_OUT, K, K, K).astype(jnp.float32)      # [co, kd, kh, kw]
    kh = jnp.arange(H)[:, None] - jnp.arange(Ho)[None, :]         # (H, Ho)
    kw = jnp.arange(W)[:, None] - jnp.arange(Wo)[None, :]         # (W, Wo)
    vh = ((kh >= 0) & (kh < K)).astype(jnp.float32)
    vw = ((kw >= 0) & (kw < K)).astype(jnp.float32)
    khc = jnp.clip(kh, 0, K - 1)
    kwc = jnp.clip(kw, 0, K - 1)
    g = wsq[:, :, khc, :]                       # (C_OUT, K, H, Ho, K)
    g = g[:, :, :, :, kwc]                      # (C_OUT, K, H, Ho, W, Wo)
    g = g * vh[None, None, :, :, None, None] * vw[None, None, None, None, :, :]
    t = jnp.transpose(g, (1, 2, 4, 0, 3, 5))    # (K, H, W, C_OUT, Ho, Wo)
    t = t.reshape(K, H * W, C_OUT, Ho * Wo)
    if howo_pad != Ho * Wo:
        t = jnp.pad(t, ((0, 0), (0, 0), (0, 0), (0, howo_pad - Ho * Wo)))
    return t.reshape(K, H * W, C_OUT * howo_pad)


def conv3d_prelu_kernel(t_ref, brow_ref, a_ref, x_ref, o_ref, acc_ref):
    """One batch tile (b_tile elements) per grid step.

    t_ref    VMEM (K, HW, N) bf16            Toeplitz conv weights, N = C_OUT*HoWo_pad
    brow_ref VMEM (1, N) f32                 conv bias repeated per channel block
    a_ref    SMEM (1,) f32                   shared PReLU alpha
    x_ref    VMEM (D*b_tile, HW) bf16        depth-major rows: row = d*b_tile + b
    o_ref    VMEM (b_tile, C_OUT*Do*HoWo_pad) f32   flattened NCDHW output
    acc_ref  VMEM (Do*b_tile, N) f32         conv accumulator (valid rows only)
    """
    b_tile = o_ref.shape[0]
    rows = x_ref.shape[0]
    depth = rows // b_tile
    d_out = depth - K + 1
    m_valid, n_cols = acc_ref.shape              # (Do*b_tile, C_OUT*HoWo_pad)
    howo_pad = n_cols // C_OUT

    # 5 MXU matmuls: depth tap kd reads the contiguous, 8-aligned row window
    # [kd*b_tile, kd*b_tile + m_valid); the (kh, kw, co) contraction happens
    # inside the Toeplitz matmul.  Tap 0 initialises the accumulator (no
    # separate zero-fill pass).
    for kd in range(K):
        xs = x_ref[pl.ds(kd * b_tile, m_valid), :]            # (m_valid, HW) bf16
        part = jnp.dot(xs, t_ref[kd], preferred_element_type=jnp.float32)
        if kd == 0:
            acc_ref[...] = part
        else:
            acc_ref[...] += part

    # One lane-dense VPU pass: conv bias + PReLU (single shared alpha), hoisted
    # out of the pack loop.
    alpha = a_ref[0]
    y = acc_ref[...] + brow_ref[...]
    acc_ref[...] = jnp.where(y > 0.0, y, alpha * y)

    # Pack rows (do, b) / cols (co, howo) into the PyTorch .view(B, -1) order
    # (co, do, ho, wo).  Every slice start is a static multiple of (8, 128), so
    # each store is a full-width unmasked vst.
    for co in range(C_OUT):
        for do in range(d_out):
            blk = acc_ref[pl.ds(do * b_tile, b_tile),
                          pl.ds(co * howo_pad, howo_pad)]      # (b_tile, HoWo_pad)
            o_ref[:, pl.ds((co * d_out + do) * howo_pad, howo_pad)] = (
                blk.astype(o_ref.dtype))


def embedding_net_forward(x, conv_w, conv_b, prelu_alpha, *, b_tile=16):
    """x: (B, D, H, W).  Returns (B, C_OUT*(D-4)*(H-4)*(W-4)) float32."""
    B, D, H, W = x.shape
    assert D >= K and H >= K and W >= K, "spatial dims must be >= kernel size"
    assert b_tile % 8 == 0, "b_tile must be a multiple of 8 (sublane tile)"
    Do, Ho, Wo = D - K + 1, H - K + 1, W - K + 1
    HW, HoWo = H * W, Ho * Wo
    howo_pad = ((HoWo + 127) // 128) * 128        # 128-lane-aligned (co, do) blocks
    N = C_OUT * howo_pad
    feat = C_OUT * Do * HoWo
    feat_pad = C_OUT * Do * howo_pad

    # Pad batch to a multiple of the batch tile.
    b_pad = ((B + b_tile - 1) // b_tile) * b_tile
    xf = x.astype(jnp.float32)
    if b_pad != B:
        xf = jnp.concatenate(
            [xf, jnp.zeros((b_pad - B, D, H, W), jnp.float32)], axis=0)
    ntiles = b_pad // b_tile

    # Depth-major row slab per batch tile: row (i*D + d)*b_tile + b holds the
    # (h, w) plane of batch i*b_tile + b at depth d (lane-dense last axis).
    x2 = (xf.reshape(ntiles, b_tile, D, HW)
            .transpose(0, 2, 1, 3)                       # (ntiles, D, b_tile, HW)
            .reshape(ntiles * D * b_tile, HW)
            .astype(jnp.bfloat16))                       # bf16 feeds the MXU

    t = _build_toeplitz_weights(conv_w, H, W, howo_pad).astype(jnp.bfloat16)
    brow = jnp.repeat(conv_b.astype(jnp.float32), howo_pad).reshape(1, N)
    alpha = prelu_alpha.astype(jnp.float32).reshape(1)

    rows = D * b_tile
    m_valid = Do * b_tile

    out = pl.pallas_call(
        conv3d_prelu_kernel,
        out_shape=jax.ShapeDtypeStruct((b_pad, feat_pad), jnp.float32),
        grid_spec=pltpu.PrefetchScalarGridSpec(
            num_scalar_prefetch=0,
            grid=(ntiles,),
            in_specs=[
                pl.BlockSpec((K, HW, N), lambda i: (0, 0, 0)),       # T (constant block)
                pl.BlockSpec((1, N), lambda i: (0, 0)),              # bias row
                pl.BlockSpec(memory_space=pltpu.MemorySpace.SMEM),   # alpha
                pl.BlockSpec((rows, HW), lambda i: (i, 0)),          # batch tile of x
            ],
            out_specs=pl.BlockSpec((b_tile, feat_pad), lambda i: (i, 0)),
            scratch_shapes=[pltpu.VMEM((m_valid, N), jnp.float32)],
        ),
        compiler_params=pltpu.CompilerParams(
            dimension_semantics=("parallel",)),
    )(t, brow, alpha, x2)

    # Strip batch padding and per-(co, do) lane padding; this reshape/slice IS
    # the PyTorch .view(B, -1) on the unpadded features.
    out = out[:B]
    if howo_pad != HoWo:
        out = out.reshape(B, C_OUT * Do, howo_pad)[:, :, :HoWo]
    return out.reshape(B, feat)


def reference_forward(x, conv_w, conv_b, prelu_alpha):
    """Pure-JAX f32 reference (lax conv) for correctness checking."""
    B = x.shape[0]
    y = lax.conv_general_dilated(
        x[:, None].astype(jnp.float32),            # (B, 1, D, H, W)
        conv_w.astype(jnp.float32),                # (C_OUT, 1, K, K, K)
        window_strides=(1, 1, 1),
        padding="VALID",
        dimension_numbers=("NCDHW", "OIDHW", "NCDHW"),
    )
    y = y + conv_b.reshape(1, C_OUT, 1, 1, 1)
    a = prelu_alpha[0]
    y = jnp.where(y > 0, y, a * y)
    return y.reshape(B, -1)


if __name__ == "__main__":
    key = jax.random.PRNGKey(0)
    k_x, k_w, k_b = jax.random.split(key, 3)

    # Small shapes consistent with the forward pass (D, H, W must be >= 5).
    # B=32 with b_tile=16: 2 parallel grid steps (one per v7x TensorCore) while
    # MXU M = Do*b_tile = 64 per step for single-TC v5e/v6e.
    B, D, H, W = 32, 8, 12, 16
    x = jax.random.normal(k_x, (B, D, H, W), dtype=jnp.float32)

    # Deterministic parameter init (shapes from nn.Conv3d(1, 5, 5) / nn.PReLU()).
    fan_in = 1 * K * K * K
    bound = 1.0 / float(jnp.sqrt(jnp.float32(fan_in)))
    conv_w = jax.random.uniform(k_w, (C_OUT, 1, K, K, K),
                                minval=-bound, maxval=bound, dtype=jnp.float32)
    conv_b = jax.random.uniform(k_b, (C_OUT,),
                                minval=-bound, maxval=bound, dtype=jnp.float32)
    prelu_alpha = jnp.array([0.25], dtype=jnp.float32)  # PyTorch PReLU default

    fwd = jax.jit(embedding_net_forward)
    out = jax.block_until_ready(fwd(x, conv_w, conv_b, prelu_alpha))

    ref = reference_forward(x, conv_w, conv_b, prelu_alpha)
    assert out.shape == (B, C_OUT * (D - 4) * (H - 4) * (W - 4)), out.shape
    max_err = float(jnp.max(jnp.abs(out - ref)))
    # Tolerance loosened vs. the f32-only version: the conv matmuls now take
    # bf16 inputs (f32 accumulation), so worst-case per-output error ~ O(1e-2).
    assert jnp.allclose(out, ref, atol=3e-2, rtol=3e-2), max_err

    print("KERNEL_OK")
</pallas_src>

<mosaic_0001>
module attributes {stable_mosaic.version = 11 : i64} {
  func.func @conv3d_prelu_kernel(%arg0: i32, %arg1: memref<5x192x640xbf16, #tpu.memory_space<vmem>>, %arg2: memref<1x640xf32, #tpu.memory_space<vmem>>, %arg3: memref<1xf32, #tpu.memory_space<smem>>, %arg4: memref<128x192xbf16, #tpu.memory_space<vmem>>, %arg5: memref<16x2560xf32, #tpu.memory_space<vmem>>, %arg6: memref<64x640xf32, #tpu.memory_space<vmem>>) attributes {dimension_semantics = [#tpu.dimension_semantics<parallel>], iteration_bounds = array<i64: 2>, scalar_prefetch = 0 : i64, scratch_operands = 1 : i64, tpu.core_type = #tpu.core_type<tc>, window_params = [{pipeline_mode = #tpu.pipeline_mode<synchronous>, transform_indices = @transform_0, window_bounds = array<i64: 5, 192, 640>}, {pipeline_mode = #tpu.pipeline_mode<synchronous>, transform_indices = @transform_1, window_bounds = array<i64: 1, 640>}, {transform_indices = @transform_2, window_bounds = array<i64: 1>}, {transform_indices = @transform_3, window_bounds = array<i64: 128, 192>}, {transform_indices = @transform_4, window_bounds = array<i64: 16, 2560>}]} {
    %c0 = arith.constant 0 : index
    %c0_0 = arith.constant 0 : index
    %0 = vector.load %arg4[%c0, %c0_0] : memref<128x192xbf16, #tpu.memory_space<vmem>>, vector<64x192xbf16>
    %c0_1 = arith.constant 0 : index
    %c0_2 = arith.constant 0 : index
    %c0_3 = arith.constant 0 : index
    %1 = vector.load %arg1[%c0_1, %c0_2, %c0_3] : memref<5x192x640xbf16, #tpu.memory_space<vmem>>, vector<1x192x640xbf16>
    %2 = vector.shape_cast %1 : vector<1x192x640xbf16> to vector<192x640xbf16>
    %cst = arith.constant dense<0.000000e+00> : vector<64x640xf32>
    %3 = tpu.matmul %0, %2, %cst {dimension_numbers = #tpu.dot_dimension_numbers<[1], [0], [0], [1], [0, 0, 1, 1], [], []>} : vector<64x192xbf16>, vector<192x640xbf16>, vector<64x640xf32> -> vector<64x640xf32>
    %c0_4 = arith.constant 0 : index
    %c0_5 = arith.constant 0 : index
    %4 = vector.load %arg6[%c0_4, %c0_5] : memref<64x640xf32, #tpu.memory_space<vmem>>, vector<64x640xf32>
    tpu.vector_store %arg6[%c0_4, %c0_5], %3 {strides = array<i32>} : memref<64x640xf32, #tpu.memory_space<vmem>>, vector<64x640xf32>,
    %c16 = arith.constant 16 : index
    %c0_6 = arith.constant 0 : index
    %5 = vector.load %arg4[%c16, %c0_6] : memref<128x192xbf16, #tpu.memory_space<vmem>>, vector<64x192xbf16>
    %c1 = arith.constant 1 : index
    %c0_7 = arith.constant 0 : index
    %c0_8 = arith.constant 0 : index
    %6 = vector.load %arg1[%c1, %c0_7, %c0_8] : memref<5x192x640xbf16, #tpu.memory_space<vmem>>, vector<1x192x640xbf16>
    %7 = vector.shape_cast %6 : vector<1x192x640xbf16> to vector<192x640xbf16>
    %cst_9 = arith.constant dense<0.000000e+00> : vector<64x640xf32>
    %8 = tpu.matmul %5, %7, %cst_9 {dimension_numbers = #tpu.dot_dimension_numbers<[1], [0], [0], [1], [0, 0, 1, 1], [], []>} : vector<64x192xbf16>, vector<192x640xbf16>, vector<64x640xf32> -> vector<64x640xf32>
    %c0_10 = arith.constant 0 : index
    %c0_11 = arith.constant 0 : index
    %9 = vector.load %arg6[%c0_10, %c0_11] : memref<64x640xf32, #tpu.memory_space<vmem>>, vector<64x640xf32>
    %10 = arith.addf %9, %8 : vector<64x640xf32>
    %c0_12 = arith.constant 0 : index
    %c0_13 = arith.constant 0 : index
    %11 = vector.load %arg6[%c0_12, %c0_13] : memref<64x640xf32, #tpu.memory_space<vmem>>, vector<64x640xf32>
    tpu.vector_store %arg6[%c0_12, %c0_13], %10 {strides = array<i32>} : memref<64x640xf32, #tpu.memory_space<vmem>>, vector<64x640xf32>,
    %c32 = arith.constant 32 : index
    %c0_14 = arith.constant 0 : index
    %12 = vector.load %arg4[%c32, %c0_14] : memref<128x192xbf16, #tpu.memory_space<vmem>>, vector<64x192xbf16>
    %c2 = arith.constant 2 : index
    %c0_15 = arith.constant 0 : index
    %c0_16 = arith.constant 0 : index
    %13 = vector.load %arg1[%c2, %c0_15, %c0_16] : memref<5x192x640xbf16, #tpu.memory_space<vmem>>, vector<1x192x640xbf16>
    %14 = vector.shape_cast %13 : vector<1x192x640xbf16> to vector<192x640xbf16>
    %cst_17 = arith.constant dense<0.000000e+00> : vector<64x640xf32>
    %15 = tpu.matmul %12, %14, %cst_17 {dimension_numbers = #tpu.dot_dimension_numbers<[1], [0], [0], [1], [0, 0, 1, 1], [], []>} : vector<64x192xbf16>, vector<192x640xbf16>, vector<64x640xf32> -> vector<64x640xf32>
    %c0_18 = arith.constant 0 : index
    %c0_19 = arith.constant 0 : index
    %16 = vector.load %arg6[%c0_18, %c0_19] : memref<64x640xf32, #tpu.memory_space<vmem>>, vector<64x640xf32>
    %17 = arith.addf %16, %15 : vector<64x640xf32>
    %c0_20 = arith.constant 0 : index
    %c0_21 = arith.constant 0 : index
    %18 = vector.load %arg6[%c0_20, %c0_21] : memref<64x640xf32, #tpu.memory_space<vmem>>, vector<64x640xf32>
    tpu.vector_store %arg6[%c0_20, %c0_21], %17 {strides = array<i32>} : memref<64x640xf32, #tpu.memory_space<vmem>>, vector<64x640xf32>,
    %c48 = arith.constant 48 : index
    %c0_22 = arith.constant 0 : index
    %19 = vector.load %arg4[%c48, %c0_22] : memref<128x192xbf16, #tpu.memory_space<vmem>>, vector<64x192xbf16>
    %c3 = arith.constant 3 : index
    %c0_23 = arith.constant 0 : index
    %c0_24 = arith.constant 0 : index
    %20 = vector.load %arg1[%c3, %c0_23, %c0_24] : memref<5x192x640xbf16, #tpu.memory_space<vmem>>, vector<1x192x640xbf16>
    %21 = vector.shape_cast %20 : vector<1x192x640xbf16> to vector<192x640xbf16>
    %cst_25 = arith.constant dense<0.000000e+00> : vector<64x640xf32>
    %22 = tpu.matmul %19, %21, %cst_25 {dimension_numbers = #tpu.dot_dimension_numbers<[1], [0], [0], [1], [0, 0, 1, 1], [], []>} : vector<64x192xbf16>, vector<192x640xbf16>, vector<64x640xf32> -> vector<64x640xf32>
    %c0_26 = arith.constant 0 : index
    %c0_27 = arith.constant 0 : index
    %23 = vector.load %arg6[%c0_26, %c0_27] : memref<64x640xf32, #tpu.memory_space<vmem>>, vector<64x640xf32>
    %24 = arith.addf %23, %22 : vector<64x640xf32>
    %c0_28 = arith.constant 0 : index
    %c0_29 = arith.constant 0 : index
    %25 = vector.load %arg6[%c0_28, %c0_29] : memref<64x640xf32, #tpu.memory_space<vmem>>, vector<64x640xf32>
    tpu.vector_store %arg6[%c0_28, %c0_29], %24 {strides = array<i32>} : memref<64x640xf32, #tpu.memory_space<vmem>>, vector<64x640xf32>,
    %c64 = arith.constant 64 : index
    %c0_30 = arith.constant 0 : index
    %26 = vector.load %arg4[%c64, %c0_30] : memref<128x192xbf16, #tpu.memory_space<vmem>>, vector<64x192xbf16>
    %c4 = arith.constant 4 : index
    %c0_31 = arith.constant 0 : index
    %c0_32 = arith.constant 0 : index
    %27 = vector.load %arg1[%c4, %c0_31, %c0_32] : memref<5x192x640xbf16, #tpu.memory_space<vmem>>, vector<1x192x640xbf16>
    %28 = vector.shape_cast %27 : vector<1x192x640xbf16> to vector<192x640xbf16>
    %cst_33 = arith.constant dense<0.000000e+00> : vector<64x640xf32>
    %29 = tpu.matmul %26, %28, %cst_33 {dimension_numbers = #tpu.dot_dimension_numbers<[1], [0], [0], [1], [0, 0, 1, 1], [], []>} : vector<64x192xbf16>, vector<192x640xbf16>, vector<64x640xf32> -> vector<64x640xf32>
    %c0_34 = arith.constant 0 : index
    %c0_35 = arith.constant 0 : index
    %30 = vector.load %arg6[%c0_34, %c0_35] : memref<64x640xf32, #tpu.memory_space<vmem>>, vector<64x640xf32>
    %31 = arith.addf %30, %29 : vector<64x640xf32>
    %c0_36 = arith.constant 0 : index
    %c0_37 = arith.constant 0 : index
    %32 = vector.load %arg6[%c0_36, %c0_37] : memref<64x640xf32, #tpu.memory_space<vmem>>, vector<64x640xf32>
    tpu.vector_store %arg6[%c0_36, %c0_37], %31 {strides = array<i32>} : memref<64x640xf32, #tpu.memory_space<vmem>>, vector<64x640xf32>,
    %c0_38 = arith.constant 0 : index
    %33 = memref.load %arg3[%c0_38] : memref<1xf32, #tpu.memory_space<smem>>
    %c0_39 = arith.constant 0 : index
    %c0_40 = arith.constant 0 : index
    %34 = vector.load %arg6[%c0_39, %c0_40] : memref<64x640xf32, #tpu.memory_space<vmem>>, vector<64x640xf32>
    %c0_41 = arith.constant 0 : index
    %c0_42 = arith.constant 0 : index
    %35 = vector.load %arg2[%c0_41, %c0_42] : memref<1x640xf32, #tpu.memory_space<vmem>>, vector<1x640xf32>
    %36 = vector.broadcast %35 : vector<1x640xf32> to vector<64x640xf32>
    %37 = arith.addf %34, %36 : vector<64x640xf32>
    %cst_43 = arith.constant 0.000000e+00 : f32
    %38 = vector.broadcast %cst_43 : f32 to vector<64x640xf32>
    %39 = arith.cmpf ogt, %37, %38 : vector<64x640xf32>
    %40 = vector.broadcast %33 : f32 to vector<64x640xf32>
    %41 = arith.mulf %40, %37 : vector<64x640xf32>
    %42 = arith.select %39, %37, %41 : vector<64x640xi1>, vector<64x640xf32>
    %c0_44 = arith.constant 0 : index
    %c0_45 = arith.constant 0 : index
    %43 = vector.load %arg6[%c0_44, %c0_45] : memref<64x640xf32, #tpu.memory_space<vmem>>, vector<64x640xf32>
    tpu.vector_store %arg6[%c0_44, %c0_45], %42 {strides = array<i32>} : memref<64x640xf32, #tpu.memory_space<vmem>>, vector<64x640xf32>,
    %c0_46 = arith.constant 0 : index
    %c0_47 = arith.constant 0 : index
    %44 = vector.load %arg6[%c0_46, %c0_47] : memref<64x640xf32, #tpu.memory_space<vmem>>, vector<16x128xf32>
    %c0_48 = arith.constant 0 : index
    %c0_49 = arith.constant 0 : index
    %45 = vector.load %arg5[%c0_48, %c0_49] : memref<16x2560xf32, #tpu.memory_space<vmem>>, vector<16x128xf32>
    tpu.vector_store %arg5[%c0_48, %c0_49], %44 {strides = array<i32>} : memref<16x2560xf32, #tpu.memory_space<vmem>>, vector<16x128xf32>,
    %c16_50 = arith.constant 16 : index
    %c0_51 = arith.constant 0 : index
    %46 = vector.load %arg6[%c16_50, %c0_51] : memref<64x640xf32, #tpu.memory_space<vmem>>, vector<16x128xf32>
    %c0_52 = arith.constant 0 : index
    %c128 = arith.constant 128 : index
    %47 = vector.load %arg5[%c0_52, %c128] : memref<16x2560xf32, #tpu.memory_space<vmem>>, vector<16x128xf32>
    tpu.vector_store %arg5[%c0_52, %c128], %46 {strides = array<i32>} : memref<16x2560xf32, #tpu.memory_space<vmem>>, vector<16x128xf32>,
    %c32_53 = arith.constant 32 : index
    %c0_54 = arith.constant 0 : index
    %48 = vector.load %arg6[%c32_53, %c0_54] : memref<64x640xf32, #tpu.memory_space<vmem>>, vector<16x128xf32>
    %c0_55 = arith.constant 0 : index
    %c256 = arith.constant 256 : index
    %49 = vector.load %arg5[%c0_55, %c256] : memref<16x2560xf32, #tpu.memory_space<vmem>>, vector<16x128xf32>
    tpu.vector_store %arg5[%c0_55, %c256], %48 {strides = array<i32>} : memref<16x2560xf32, #tpu.memory_space<vmem>>, vector<16x128xf32>,
    %c48_56 = arith.constant 48 : index
    %c0_57 = arith.constant 0 : index
    %50 = vector.load %arg6[%c48_56, %c0_57] : memref<64x640xf32, #tpu.memory_space<vmem>>, vector<16x128xf32>
    %c0_58 = arith.constant 0 : index
    %c384 = arith.constant 384 : index
    %51 = vector.load %arg5[%c0_58, %c384] : memref<16x2560xf32, #tpu.memory_space<vmem>>, vector<16x128xf32>
    tpu.vector_store %arg5[%c0_58, %c384], %50 {strides = array<i32>} : memref<16x2560xf32, #tpu.memory_space<vmem>>, vector<16x128xf32>,
    %c0_59 = arith.constant 0 : index
    %c128_60 = arith.constant 128 : index
    %52 = vector.load %arg6[%c0_59, %c128_60] : memref<64x640xf32, #tpu.memory_space<vmem>>, vector<16x128xf32>
    %c0_61 = arith.constant 0 : index
    %c512 = arith.constant 512 : index
    %53 = vector.load %arg5[%c0_61, %c512] : memref<16x2560xf32, #tpu.memory_space<vmem>>, vector<16x128xf32>
    tpu.vector_store %arg5[%c0_61, %c512], %52 {strides = array<i32>} : memref<16x2560xf32, #tpu.memory_space<vmem>>, vector<16x128xf32>,
    %c16_62 = arith.constant 16 : index
    %c128_63 = arith.constant 128 : index
    %54 = vector.load %arg6[%c16_62, %c128_63] : memref<64x640xf32, #tpu.memory_space<vmem>>, vector<16x128xf32>
    %c0_64 = arith.constant 0 : index
    %c640 = arith.constant 640 : index
    %55 = vector.load %arg5[%c0_64, %c640] : memref<16x2560xf32, #tpu.memory_space<vmem>>, vector<16x128xf32>
    tpu.vector_store %arg5[%c0_64, %c640], %54 {strides = array<i32>} : memref<16x2560xf32, #tpu.memory_space<vmem>>, vector<16x128xf32>,
    %c32_65 = arith.constant 32 : index
    %c128_66 = arith.constant 128 : index
    %56 = vector.load %arg6[%c32_65, %c128_66] : memref<64x640xf32, #tpu.memory_space<vmem>>, vector<16x128xf32>
    %c0_67 = arith.constant 0 : index
    %c768 = arith.constant 768 : index
    %57 = vector.load %arg5[%c0_67, %c768] : memref<16x2560xf32, #tpu.memory_space<vmem>>, vector<16x128xf32>
    tpu.vector_store %arg5[%c0_67, %c768], %56 {strides = array<i32>} : memref<16x2560xf32, #tpu.memory_space<vmem>>, vector<16x128xf32>,
    %c48_68 = arith.constant 48 : index
    %c128_69 = arith.constant 128 : index
    %58 = vector.load %arg6[%c48_68, %c128_69] : memref<64x640xf32, #tpu.memory_space<vmem>>, vector<16x128xf32>
    %c0_70 = arith.constant 0 : index
    %c896 = arith.constant 896 : index
    %59 = vector.load %arg5[%c0_70, %c896] : memref<16x2560xf32, #tpu.memory_space<vmem>>, vector<16x128xf32>
    tpu.vector_store %arg5[%c0_70, %c896], %58 {strides = array<i32>} : memref<16x2560xf32, #tpu.memory_space<vmem>>, vector<16x128xf32>,
    %c0_71 = arith.constant 0 : index
    %c256_72 = arith.constant 256 : index
    %60 = vector.load %arg6[%c0_71, %c256_72] : memref<64x640xf32, #tpu.memory_space<vmem>>, vector<16x128xf32>
    %c0_73 = arith.constant 0 : index
    %c1024 = arith.constant 1024 : index
    %61 = vector.load %arg5[%c0_73, %c1024] : memref<16x2560xf32, #tpu.memory_space<vmem>>, vector<16x128xf32>
    tpu.vector_store %arg5[%c0_73, %c1024], %60 {strides = array<i32>} : memref<16x2560xf32, #tpu.memory_space<vmem>>, vector<16x128xf32>,
    %c16_74 = arith.constant 16 : index
    %c256_75 = arith.constant 256 : index
    %62 = vector.load %arg6[%c16_74, %c256_75] : memref<64x640xf32, #tpu.memory_space<vmem>>, vector<16x128xf32>
    %c0_76 = arith.constant 0 : index
    %c1152 = arith.constant 1152 : index
    %63 = vector.load %arg5[%c0_76, %c1152] : memref<16x2560xf32, #tpu.memory_space<vmem>>, vector<16x128xf32>
    tpu.vector_store %arg5[%c0_76, %c1152], %62 {strides = array<i32>} : memref<16x2560xf32, #tpu.memory_space<vmem>>, vector<16x128xf32>,
    %c32_77 = arith.constant 32 : index
    %c256_78 = arith.constant 256 : index
    %64 = vector.load %arg6[%c32_77, %c256_78] : memref<64x640xf32, #tpu.memory_space<vmem>>, vector<16x128xf32>
    %c0_79 = arith.constant 0 : index
    %c1280 = arith.constant 1280 : index
    %65 = vector.load %arg5[%c0_79, %c1280] : memref<16x2560xf32, #tpu.memory_space<vmem>>, vector<16x128xf32>
    tpu.vector_store %arg5[%c0_79, %c1280], %64 {strides = array<i32>} : memref<16x2560xf32, #tpu.memory_space<vmem>>, vector<16x128xf32>,
    %c48_80 = arith.constant 48 : index
    %c256_81 = arith.constant 256 : index
    %66 = vector.load %arg6[%c48_80, %c256_81] : memref<64x640xf32, #tpu.memory_space<vmem>>, vector<16x128xf32>
    %c0_82 = arith.constant 0 : index
    %c1408 = arith.constant 1408 : index
    %67 = vector.load %arg5[%c0_82, %c1408] : memref<16x2560xf32, #tpu.memory_space<vmem>>, vector<16x128xf32>
    tpu.vector_store %arg5[%c0_82, %c1408], %66 {strides = array<i32>} : memref<16x2560xf32, #tpu.memory_space<vmem>>, vector<16x128xf32>,
    %c0_83 = arith.constant 0 : index
    %c384_84 = arith.constant 384 : index
    %68 = vector.load %arg6[%c0_83, %c384_84] : memref<64x640xf32, #tpu.memory_space<vmem>>, vector<16x128xf32>
    %c0_85 = arith.constant 0 : index
    %c1536 = arith.constant 1536 : index
    %69 = vector.load %arg5[%c0_85, %c1536] : memref<16x2560xf32, #tpu.memory_space<vmem>>, vector<16x128xf32>
    tpu.vector_store %arg5[%c0_85, %c1536], %68 {strides = array<i32>} : memref<16x2560xf32, #tpu.memory_space<vmem>>, vector<16x128xf32>,
    %c16_86 = arith.constant 16 : index
    %c384_87 = arith.constant 384 : index
    %70 = vector.load %arg6[%c16_86, %c384_87] : memref<64x640xf32, #tpu.memory_space<vmem>>, vector<16x128xf32>
    %c0_88 = arith.constant 0 : index
    %c1664 = arith.constant 1664 : index
    %71 = vector.load %arg5[%c0_88, %c1664] : memref<16x2560xf32, #tpu.memory_space<vmem>>, vector<16x128xf32>
    tpu.vector_store %arg5[%c0_88, %c1664], %70 {strides = array<i32>} : memref<16x2560xf32, #tpu.memory_space<vmem>>, vector<16x128xf32>,
    %c32_89 = arith.constant 32 : index
    %c384_90 = arith.constant 384 : index
    %72 = vector.load %arg6[%c32_89, %c384_90] : memref<64x640xf32, #tpu.memory_space<vmem>>, vector<16x128xf32>
    %c0_91 = arith.constant 0 : index
    %c1792 = arith.constant 1792 : index
    %73 = vector.load %arg5[%c0_91, %c1792] : memref<16x2560xf32, #tpu.memory_space<vmem>>, vector<16x128xf32>
    tpu.vector_store %arg5[%c0_91, %c1792], %72 {strides = array<i32>} : memref<16x2560xf32, #tpu.memory_space<vmem>>, vector<16x128xf32>,
    %c48_92 = arith.constant 48 : index
    %c384_93 = arith.constant 384 : index
    %74 = vector.load %arg6[%c48_92, %c384_93] : memref<64x640xf32, #tpu.memory_space<vmem>>, vector<16x128xf32>
    %c0_94 = arith.constant 0 : index
    %c1920 = arith.constant 1920 : index
    %75 = vector.load %arg5[%c0_94, %c1920] : memref<16x2560xf32, #tpu.memory_space<vmem>>, vector<16x128xf32>
    tpu.vector_store %arg5[%c0_94, %c1920], %74 {strides = array<i32>} : memref<16x2560xf32, #tpu.memory_space<vmem>>, vector<16x128xf32>,
    %c0_95 = arith.constant 0 : index
    %c512_96 = arith.constant 512 : index
    %76 = vector.load %arg6[%c0_95, %c512_96] : memref<64x640xf32, #tpu.memory_space<vmem>>, vector<16x128xf32>
    %c0_97 = arith.constant 0 : index
    %c2048 = arith.constant 2048 : index
    %77 = vector.load %arg5[%c0_97, %c2048] : memref<16x2560xf32, #tpu.memory_space<vmem>>, vector<16x128xf32>
    tpu.vector_store %arg5[%c0_97, %c2048], %76 {strides = array<i32>} : memref<16x2560xf32, #tpu.memory_space<vmem>>, vector<16x128xf32>,
    %c16_98 = arith.constant 16 : index
    %c512_99 = arith.constant 512 : index
    %78 = vector.load %arg6[%c16_98, %c512_99] : memref<64x640xf32, #tpu.memory_space<vmem>>, vector<16x128xf32>
    %c0_100 = arith.constant 0 : index
    %c2176 = arith.constant 2176 : index
    %79 = vector.load %arg5[%c0_100, %c2176] : memref<16x2560xf32, #tpu.memory_space<vmem>>, vector<16x128xf32>
    tpu.vector_store %arg5[%c0_100, %c2176], %78 {strides = array<i32>} : memref<16x2560xf32, #tpu.memory_space<vmem>>, vector<16x128xf32>,
    %c32_101 = arith.constant 32 : index
    %c512_102 = arith.constant 512 : index
    %80 = vector.load %arg6[%c32_101, %c512_102] : memref<64x640xf32, #tpu.memory_space<vmem>>, vector<16x128xf32>
    %c0_103 = arith.constant 0 : index
    %c2304 = arith.constant 2304 : index
    %81 = vector.load %arg5[%c0_103, %c2304] : memref<16x2560xf32, #tpu.memory_space<vmem>>, vector<16x128xf32>
    tpu.vector_store %arg5[%c0_103, %c2304], %80 {strides = array<i32>} : memref<16x2560xf32, #tpu.memory_space<vmem>>, vector<16x128xf32>,
    %c48_104 = arith.constant 48 : index
    %c512_105 = arith.constant 512 : index
    %82 = vector.load %arg6[%c48_104, %c512_105] : memref<64x640xf32, #tpu.memory_space<vmem>>, vector<16x128xf32>
    %c0_106 = arith.constant 0 : index
    %c2432 = arith.constant 2432 : index
    %83 = vector.load %arg5[%c0_106, %c2432] : memref<16x2560xf32, #tpu.memory_space<vmem>>, vector<16x128xf32>
    tpu.vector_store %arg5[%c0_106, %c2432], %82 {strides = array<i32>} : memref<16x2560xf32, #tpu.memory_space<vmem>>, vector<16x128xf32>,
    return
  }
  func.func @transform_0(%arg0: i32) -> (i32, i32, i32) {
    %c0_i32 = arith.constant 0 : i32
    %c0_i32_0 = arith.constant 0 : i32
    %c0_i32_1 = arith.constant 0 : i32
    %c0_i32_2 = arith.constant 0 : i32
    return %c0_i32, %c0_i32_0, %c0_i32_1 : i32, i32, i32
  }
  func.func @transform_1(%arg0: i32) -> (i32, i32) {
    %c0_i32 = arith.constant 0 : i32
    %c0_i32_0 = arith.constant 0 : i32
    %c0_i32_1 = arith.constant 0 : i32
    return %c0_i32, %c0_i32_0 : i32, i32
  }
  func.func @transform_2(%arg0: i32) -> i32 {
    %c0_i32 = arith.constant 0 : i32
    %c0_i32_0 = arith.constant 0 : i32
    return %c0_i32 : i32
  }
  func.func @transform_3(%arg0: i32) -> (i32, i32) {
    %c0_i32 = arith.constant 0 : i32
    %c0_i32_0 = arith.constant 0 : i32
    return %arg0, %c0_i32 : i32, i32
  }
  func.func @transform_4(%arg0: i32) -> (i32, i32) {
    %c0_i32 = arith.constant 0 : i32
    %c0_i32_0 = arith.constant 0 : i32
    return %arg0, %c0_i32 : i32, i32
  }
}

</mosaic_0001>

<bundles_post_ra>
// kernel: embedding_net_forward.1
= control target key start
LH: loop header
LB: loop body
LE: loop exit
PB: predicated region body
PF: predicated region fallthrough
CT: control target
= control target key end

     0   :  { %s5626_s17 = smov 0   ;;  %s7443_s0 = inlined_call_operand.vmem [shape: bf16[5,192,640], index: 0, kind: input, shape index: {}]   ;;  %s7444_s1 = inlined_call_operand.vmem [shape: f32[1,640], index: 1, kind: input, shape index: {}]   ;;  %s7445_s2 = inlined_call_operand.<no memory space> [shape: f32[1], index: 2, kind: input, shape index: {}]   ;;  %s7446_s3 = inlined_call_operand.vmem [shape: bf16[256,192], index: 3, kind: input, shape index: {}]   ;;  %s7447_s4 = inlined_call_operand.vmem [shape: f32[32,2560], index: 4, kind: output, shape index: {}]  }
   0x1   :  { %9 = sst [smem:[#allocation3]] %s7445_s2 }
   0x2 LB: > { %s4395_s18 = sadd.s32 4294967295, %s5595_s17   ;;  %p4399_p0 = scmp.ge.s32.totalorder %s5595_s17, 1  ;;  %s5595_s17 = sphi %s5626_s17, %s15_s17  }
   0x3   : > { %p165_p1 = scmp.lt.s32.totalorder %s5595_s17, 3 }
   0x5   : > { %p166_p2 = pnand %p4399_p0, %p165_p1 }
   0x7   : > { %169 = sbr.rel (%p166_p2) target bundleno = 611 (0x263), region = 36 }
   0xc   : > { %v5130_v0 = vld [vmem:[%s7443_s0 + $0x11c] ss:$20 sps:$4 sm:$0xff]   ;;  %v5132_v1 = vld [vmem:[%s7443_s0 + $0x124] ss:$20 sps:$4 sm:$0xff]   ;;  %v5135_v3 = vld [vmem:[%s7443_s0 + $0x120] ss:$20 sps:$4 sm:$0xff]  }
   0xd   : > { %649 = vmatprep.subr.bf16.mxu0 %v5130_v0  ;;  %v5134_v2 = vld [vmem:[%s7443_s0 + $0x118] ss:$20 sps:$4 sm:$0xff]   ;;  %722 = vmatprep.subr.bf16.mxu1 %v5132_v1  ;;  %v5136_v4 = vld [vmem:[%s7443_s0 + $0xf4] ss:$20 sps:$4 sm:$0xff]   ;;  %v5138_v5 = vld [vmem:[%s7443_s0 + $0xfc] ss:$20 sps:$4 sm:$0xff]  }
   0xe   : > { %650 = vmatpush1.bf16.msra.mxu0 %v5134_v2  ;;  %723 = vmatpush1.bf16.msra.mxu1 %v5135_v3  ;;  %v5140_v6 = vld [vmem:[%s7443_s0 + $0xf0] ss:$20 sps:$4 sm:$0xff]   ;;  %v5141_v7 = vld [vmem:[%s7443_s0 + $0xf8] ss:$20 sps:$4 sm:$0xff]   ;;  %v5144_v9 = vld [vmem:[%s7443_s0 + $0xd4] ss:$20 sps:$4 sm:$0xff]  }
   0xf   : > { %651 = vmatprep.subr.bf16.mxu0 %v5136_v4  ;;  %724 = vmatprep.subr.bf16.mxu1 %v5138_v5  ;;  %v5142_v8 = vld [vmem:[%s7443_s0 + $0xcc] ss:$20 sps:$4 sm:$0xff]   ;;  %v5146_v10 = vld [vmem:[%s7443_s0 + $0xc8] ss:$20 sps:$4 sm:$0xff]   ;;  %v5147_v11 = vld [vmem:[%s7443_s0 + $0xd0] ss:$20 sps:$4 sm:$0xff]  }
  0x10   : > { %v5148_v12 = vld [vmem:[%s7443_s0 + $0xa4] ss:$20 sps:$4 sm:$0xff]   ;;  %v5150_v13 = vld [vmem:[%s7443_s0 + $0xac] ss:$20 sps:$4 sm:$0xff]   ;;  %v5153_v15 = vld [vmem:[%s7443_s0 + $0xa8] ss:$20 sps:$4 sm:$0xff]  }
  0x11   : > { %v5152_v14 = vld [vmem:[%s7443_s0 + $0xa0] ss:$20 sps:$4 sm:$0xff]   ;;  %v5154_v16 = vld [vmem:[%s7443_s0 + $0x7c] ss:$20 sps:$4 sm:$0xff]   ;;  %v5156_v17 = vld [vmem:[%s7443_s0 + $0x84] ss:$20 sps:$4 sm:$0xff]  }
  0x12   : > { %652 = vmatpush1.bf16.msra.mxu0 %v5140_v6  ;;  %725 = vmatpush1.bf16.msra.mxu1 %v5141_v7  ;;  %v5158_v18 = vld [vmem:[%s7443_s0 + $0x78] ss:$20 sps:$4 sm:$0xff]   ;;  %v5159_v19 = vld [vmem:[%s7443_s0 + $0x80] ss:$20 sps:$4 sm:$0xff]   ;;  %s4400_s7 = sshll.u32 %s4395_s18, 4  ;;  %vm636_vm0 = vcmask 523264  }
  0x13   : > { %653 = vmatprep.subr.bf16.mxu0 %v5142_v8  ;;  %726 = vmatprep.subr.bf16.mxu1 %v5144_v9  ;;  %v5160_v20 = vld [vmem:[%s7443_s0 + $0x54] ss:$20 sps:$4 sm:$0xff]   ;;  %v5162_v21 = vld [vmem:[%s7443_s0 + $0x5c] ss:$20 sps:$4 sm:$0xff]   ;;  %p194_p3 = scmp.lt.s32.totalorder %s4400_s7, 31  ;;  %v7448_v53 = vmov 0  }
  0x14   : > { %v5164_v22 = vld [vmem:[%s7443_s0 + $0x50] ss:$20 sps:$4 sm:$0xff]   ;;  %v5165_v23 = vld [vmem:[%s7443_s0 + $0x58] ss:$20 sps:$4 sm:$0xff]   ;;  %v5168_v25 = vld [vmem:[%s7443_s0 + $0x34] ss:$20 sps:$4 sm:$0xff]  }
  0x15   : > { %v5166_v24 = vld [vmem:[%s7443_s0 + $0x2c] ss:$20 sps:$4 sm:$0xff]   ;;  %s7485_s7 = smov (!%p194_p3, %s4400_s7), 31  ;;  %v5170_v26 = vld [vmem:[%s7443_s0 + $0x28] ss:$20 sps:$4 sm:$0xff]   ;;  %s4403_s20 = sshll.u32 %s4395_s18, 1 }
  0x16   : > { %654 = vmatpush1.bf16.msra.mxu0 %v5146_v10  ;;  %727 = vmatpush1.bf16.msra.mxu1 %v5147_v11  ;;  %v5171_v27 = vld [vmem:[%s7443_s0 + $0x30] ss:$20 sps:$4 sm:$0xff]   ;;  %v5174_v29 = vld [vmem:[%s7443_s0 + $0xc] ss:$20 sps:$4 sm:$0xff]   ;;  %s5095_s29 = sshll.u32 %s7485_s7, 3  ;;  %s3988_s2 = sld [smem:[#allocation3]] }
  0x17   : > { %655 = vmatprep.subr.bf16.mxu0 %v5148_v12  ;;  %728 = vmatprep.subr.bf16.mxu1 %v5150_v13  ;;  %v5172_v28 = vld [vmem:[%s7443_s0 + $0x4] ss:$20 sps:$4 sm:$0xff]   ;;  %v5176_v30 = vld [vmem:[%s7443_s0] ss:$20 sps:$4 sm:$0xff]   ;;  %v5177_v31 = vld [vmem:[%s7443_s0 + $0x8] ss:$20 sps:$4 sm:$0xff]   ;;  %s5741_s14 = scalar_lea.vmem %s7446_s3, %s5095_s29 }
  0x18   : > { %v5178_v32 = vld [vmem:[%s7443_s0 + $0x1bc] ss:$20 sps:$4 sm:$0xff]   ;;  %v5180_v33 = vld [vmem:[%s7443_s0 + $0x1c4] ss:$20 sps:$4 sm:$0xff]   ;;  %v5183_v35 = vld [vmem:[%s7443_s0 + $0x1c0] ss:$20 sps:$4 sm:$0xff]  }
  0x19   : > { %v5182_v34 = vld [vmem:[%s7443_s0 + $0x1b8] ss:$20 sps:$4 sm:$0xff]   ;;  %v5184_v36 = vld [vmem:[%s7443_s0 + $0x194] ss:$20 sps:$4 sm:$0xff]   ;;  %v5186_v38 = vld [vmem:[%s7443_s0 + $0x19c] ss:$20 sps:$4 sm:$0xff]  }
  0x1a   : > { %656 = vmatpush1.bf16.msra.mxu0 %v5152_v14  ;;  %729 = vmatpush1.bf16.msra.mxu1 %v5153_v15  ;;  %v5753_v37 = vld [vmem:[%s5741_s14 + $0x4] ss:$8 sps:$4 sm:$0xff]   ;;  %v5192_v42 = vld [vmem:[%s7443_s0 + $0x174] ss:$20 sps:$4 sm:$0xff]   ;;  %v5207_v49 = vld [vmem:[%s7443_s0 + $0x2fc] ss:$20 sps:$4 sm:$0xff]  }
  0x1b   : > { %657 = vmatprep.subr.bf16.mxu0 %v5154_v16  ;;  %730 = vmatprep.subr.bf16.mxu1 %v5156_v17  ;;  %v5188_v39 = vld [vmem:[%s7443_s0 + $0x190] ss:$20 sps:$4 sm:$0xff]   ;;  %v5189_v40 = vld [vmem:[%s7443_s0 + $0x198] ss:$20 sps:$4 sm:$0xff]   ;;  %v5194_v43 = vld [vmem:[%s7443_s0 + $0x168] ss:$20 sps:$4 sm:$0xff]  }
  0x1c   : > { %4473 = vmatprep.mubr.msk.bf16.mxu0 %vm636_vm0, %v5753_v37  ;;  %4477 = vmatprep.mubr.msk.bf16.mxu1 %vm636_vm0, %v5753_v37  ;;  %v5190_v41 = vld [vmem:[%s7443_s0 + $0x16c] ss:$20 sps:$4 sm:$0xff]   ;;  %v5195_v44 = vld [vmem:[%s7443_s0 + $0x170] ss:$20 sps:$4 sm:$0xff]   ;;  %v5201_v48 = vld [vmem:[%s7443_s0 + $0x148] ss:$20 sps:$4 sm:$0xff]  }
  0x1d   : > { %v5196_v45 = vld [vmem:[%s7443_s0 + $0x144] ss:$20 sps:$4 sm:$0xff]   ;;  %v5198_v46 = vld [vmem:[%s7443_s0 + $0x14c] ss:$20 sps:$4 sm:$0xff]   ;;  %v5208_v52 = vld [vmem:[%s7443_s0 + $0x128] ss:$20 sps:$4 sm:$0xff]  }
  0x1e   : > { %658 = vmatpush1.bf16.msra.mxu0 %v5158_v18  ;;  %731 = vmatpush1.bf16.msra.mxu1 %v5159_v19  ;;  %v5200_v47 = vld [vmem:[%s7443_s0 + $0x140] ss:$20 sps:$4 sm:$0xff]   ;;  %v5205_v51 = vld [vmem:[%s7443_s0 + $0x2f8] ss:$20 sps:$4 sm:$0xff]   ;;  %v5209_v56 = vld [vmem:[%s7443_s0 + $0x2d0] ss:$20 sps:$4 sm:$0xff]  }
  0x1f   : > { %659 = vmatprep.subr.bf16.mxu0 %v5160_v20  ;;  %732 = vmatprep.subr.bf16.mxu1 %v5162_v21  ;;  %v5796_v50 = vld [vmem:[%s5741_s14] ss:$8 sps:$4 sm:$0xff]   ;;  %v5809_v55 = vld [vmem:[%s5741_s14 + $0x14] ss:$8 sps:$4 sm:$0xff]   ;;  %v5831_v60 = vld [vmem:[%s5741_s14 + $0x10] ss:$8 sps:$4 sm:$0xff]  }
  0x20   : > { %v5211_v54 = vld [vmem:[%s7443_s0 + $0x2d4] ss:$20 sps:$4 sm:$0xff]   ;;  %v5215_v58 = vld [vmem:[%s7443_s0 + $0x2ac] ss:$20 sps:$4 sm:$0xff]   ;;  %v5219_v62 = vld [vmem:[%s7443_s0 + $0x284] ss:$20 sps:$4 sm:$0xff]  }
  0x21   : > { %v5212_v57 = vld [vmem:[%s7443_s0 + $0x100] ss:$20 sps:$4 sm:$0xff]   ;;  %v5213_v59 = vld [vmem:[%s7443_s0 + $0x2a8] ss:$20 sps:$4 sm:$0xff]   ;;  %v5216_v61 = vld [vmem:[%s7443_s0 + $0xd8] ss:$20 sps:$4 sm:$0xff]  }
  0x22   : > { %660 = vmatpush1.bf16.msra.mxu0 %v5164_v22  ;;  %733 = vmatpush1.bf16.msra.mxu1 %v5165_v23  ;;  %v5841_v63 = vld [vmem:[%s5741_s14 + $0x24] ss:$8 sps:$4 sm:$0xff]   ;;  %v5217_v0 = vld [vmem:[%s7443_s0 + $0x280] ss:$20 sps:$4 sm:$0xff]   ;;  %v5223_v2 = vld [vmem:[%s7443_s0 + $0x25c] ss:$20 sps:$4 sm:$0xff]  }
  0x23   : > { %661 = vmatprep.subr.bf16.mxu0 %v5166_v24  ;;  %734 = vmatprep.subr.bf16.mxu1 %v5168_v25  ;;  %v5220_v1 = vld [vmem:[%s7443_s0 + $0xb0] ss:$20 sps:$4 sm:$0xff]   ;;  %v5221_v3 = vld [vmem:[%s7443_s0 + $0x258] ss:$20 sps:$4 sm:$0xff]   ;;  %v5863_v4 = vld [vmem:[%s5741_s14 + $0x20] ss:$8 sps:$4 sm:$0xff]  }
  0x24   : > { %v5224_v5 = vld [vmem:[%s7443_s0 + $0x88] ss:$20 sps:$4 sm:$0xff]   ;;  %v5228_v8 = vld [vmem:[%s7443_s0 + $0x230] ss:$20 sps:$4 sm:$0xff]   ;;  %v5231_v9 = vld [vmem:[%s7443_s0 + $0x60] ss:$20 sps:$4 sm:$0xff]  }
  0x25   : > { %v5230_v6 = vld [vmem:[%s7443_s0 + $0x234] ss:$20 sps:$4 sm:$0xff]   ;;  %v5234_v10 = vld [vmem:[%s7443_s0 + $0x20c] ss:$20 sps:$4 sm:$0xff]   ;;  %v5895_v12 = vld [vmem:[%s5741_s14 + $0x30] ss:$8 sps:$4 sm:$0xff]  }
  0x26   : > { %662 = vmatpush1.bf16.msra.mxu0 %v5170_v26  ;;  %735 = vmatpush1.bf16.msra.mxu1 %v5171_v27  ;;  %v5873_v7 = vld [vmem:[%s5741_s14 + $0x34] ss:$8 sps:$4 sm:$0xff]   ;;  %v5235_v13 = vld [vmem:[%s7443_s0 + $0x38] ss:$20 sps:$4 sm:$0xff]   ;;  %v5242_v16 = vld [vmem:[%s7443_s0 + $0x10] ss:$20 sps:$4 sm:$0xff]  }
  0x27   : > { %663 = vmatprep.subr.bf16.mxu0 %v5172_v28  ;;  %736 = vmatprep.subr.bf16.mxu1 %v5174_v29  ;;  %v5232_v11 = vld [vmem:[%s7443_s0 + $0x208] ss:$20 sps:$4 sm:$0xff]   ;;  %v5241_v14 = vld [vmem:[%s7443_s0 + $0x1e4] ss:$20 sps:$4 sm:$0xff]   ;;  %v5239_v15 = vld [vmem:[%s7443_s0 + $0x1e0] ss:$20 sps:$4 sm:$0xff]  }
  0x28   : > { %v5245_v17 = vld [vmem:[%s7443_s0 + $0x39c] ss:$20 sps:$4 sm:$0xff]   ;;  %v5243_v18 = vld [vmem:[%s7443_s0 + $0x398] ss:$20 sps:$4 sm:$0xff]   ;;  %v5252_v20 = vld [vmem:[%s7443_s0 + $0x374] ss:$20 sps:$4 sm:$0xff]  }
  0x29   : > { %v5246_v19 = vld [vmem:[%s7443_s0 + $0x1c8] ss:$20 sps:$4 sm:$0xff]   ;;  %v5250_v21 = vld [vmem:[%s7443_s0 + $0x370] ss:$20 sps:$4 sm:$0xff]   ;;  %v5253_v22 = vld [vmem:[%s7443_s0 + $0x1a0] ss:$20 sps:$4 sm:$0xff]  }
  0x2a   : > { %664 = vmatpush1.bf16.msra.mxu0 %v5176_v30  ;;  %737 = vmatpush1.bf16.msra.mxu1 %v5177_v31  ;;  %v5256_v23 = vld [vmem:[%s7443_s0 + $0x34c] ss:$20 sps:$4 sm:$0xff]   ;;  %v5254_v24 = vld [vmem:[%s7443_s0 + $0x348] ss:$20 sps:$4 sm:$0xff]   ;;  %v5260_v26 = vld [vmem:[%s7443_s0 + $0x324] ss:$20 sps:$4 sm:$0xff]  }
  0x2b   : > { %673 = vmatprep.subr.bf16.mxu0 %v5178_v32  ;;  %746 = vmatprep.subr.bf16.mxu1 %v5180_v33  ;;  %v5257_v25 = vld [vmem:[%s7443_s0 + $0x178] ss:$20 sps:$4 sm:$0xff]   ;;  %v5258_v27 = vld [vmem:[%s7443_s0 + $0x320] ss:$20 sps:$4 sm:$0xff]   ;;  %v5261_v28 = vld [vmem:[%s7443_s0 + $0x150] ss:$20 sps:$4 sm:$0xff]  }
  0x2c   : > { %v5264_v29 = vld [vmem:[%s7443_s0 + $0x304] ss:$20 sps:$4 sm:$0xff]   ;;  %v5262_v30 = vld [vmem:[%s7443_s0 + $0x300] ss:$20 sps:$4 sm:$0xff]   ;;  %v5265_v31 = vld [vmem:[%s7443_s0 + $0x308] ss:$20 sps:$4 sm:$0xff]  }
  0x2d   : > { %v5268_v32 = vld [vmem:[%s7443_s0 + $0x2dc] ss:$20 sps:$4 sm:$0xff]   ;;  %v5266_v33 = vld [vmem:[%s7443_s0 + $0x2d8] ss:$20 sps:$4 sm:$0xff]   ;;  %p201_p4 = scmp.lt.s32.totalorder %s4403_s20, 3 }
  0x2e   : > { %674 = vmatpush2.bf16.msra.mxu0 %v5182_v34  ;;  %747 = vmatpush2.bf16.msra.mxu1 %v5183_v35  ;;  %v5269_v34 = vld [vmem:[%s7443_s0 + $0x2e0] ss:$20 sps:$4 sm:$0xff]  }
  0x2f   : > { %675 = vmatprep.subr.bf16.mxu0 %v5184_v36  ;;  %748 = vmatprep.subr.bf16.mxu1 %v5186_v38  ;;  %v5272_v35 = vld [vmem:[%s7443_s0 + $0x2b4] ss:$20 sps:$4 sm:$0xff]   ;;  %v5270_v36 = vld [vmem:[%s7443_s0 + $0x2b0] ss:$20 sps:$4 sm:$0xff]   ;;  %v5276_v38 = vld [vmem:[%s7443_s0 + $0x28c] ss:$20 sps:$4 sm:$0xff]  }
  0x30   : > { %s7487_s20 = smov (!%p201_p4, %s4403_s20), 3 }
  0x31   : > { %s5120_s18 = smul.u32 160, %s7487_s20 }
  0x32   : > { %676 = vmatpush2.bf16.msra.mxu0 %v5188_v39  ;;  %749 = vmatpush2.bf16.msra.mxu1 %v5189_v40  ;;  %v5274_v39 = vld [vmem:[%s7443_s0 + $0x288] ss:$20 sps:$4 sm:$0xff]   ;;  %v5277_v40 = vld [vmem:[%s7443_s0 + $0x290] ss:$20 sps:$4 sm:$0xff]  }
  0x33   : > { %677 = vmatprep.subr.bf16.mxu0 %v5190_v41  ;;  %750 = vmatprep.subr.bf16.mxu1 %v5192_v42  ;;  %v5280_v41 = vld [vmem:[%s7443_s0 + $0x264] ss:$20 sps:$4 sm:$0xff]   ;;  %v5278_v42 = vld [vmem:[%s7443_s0 + $0x260] ss:$20 sps:$4 sm:$0xff]   ;;  %s7293_s25 = scalar_lea.vmem %s7447_s4, %s5120_s18 }
  0x36   : > { %678 = vmatpush2.bf16.msra.mxu0 %v5194_v43  ;;  %751 = vmatpush2.bf16.msra.mxu1 %v5195_v44  ;;  %v5281_v43 = vld [vmem:[%s7443_s0 + $0x268] ss:$20 sps:$4 sm:$0xff]  }
  0x37   : > { %679 = vmatprep.subr.bf16.mxu0 %v5196_v45  ;;  %752 = vmatprep.subr.bf16.mxu1 %v5198_v46  ;;  %v5284_v44 = vld [vmem:[%s7443_s0 + $0x23c] ss:$20 sps:$4 sm:$0xff]   ;;  %v6023_v45 = vld [vmem:[%s5741_s14 + $0x44] ss:$8 sps:$4 sm:$0xff]  }
  0x38   : > { %v5282_v46 = vld [vmem:[%s7443_s0 + $0x238] ss:$20 sps:$4 sm:$0xff]  }
  0x3a   : > { %680 = vmatpush2.bf16.msra.mxu0 %v5200_v47  ;;  %753 = vmatpush2.bf16.msra.mxu1 %v5201_v48  ;;  %v5285_v47 = vld [vmem:[%s7443_s0 + $0x240] ss:$20 sps:$4 sm:$0xff]  }
  0x3b   : > { %795 = vmatprep.subr.bf16.mxu0 %v7448_v53  ;;  %1341 = vmatprep.subr.bf16.mxu1 %v5207_v49  ;;  %v5291_v48 = vld [vmem:[%s7443_s0 + $0x214] ss:$20 sps:$4 sm:$0xff]  }
  0x3c   : > { %v6042_v49 = vld [vmem:[%s5741_s14 + $0x40] ss:$8 sps:$4 sm:$0xff]  }
  0x3d   : > { %682 = vmatmul.mubr.bf16.vlgmr.msra.gmra.mxu0 %v5796_v50  ;;  %755 = vmatmul.mubr.bf16.vlgmr.msra.gmra.mxu1 %v5796_v50 }
  0x3e   : > { %796 = vmatpush1.bf16.msra.mxu0 %v5208_v52  ;;  %1342 = vmatpush1.bf16.msra.mxu1 %v5205_v51  ;;  %v5292_v51 = vld [vmem:[%s7443_s0 + $0x218] ss:$20 sps:$4 sm:$0xff]  }
  0x3f   : > { %797 = vmatprep.subr.bf16.mxu0 %v7448_v53  ;;  %1343 = vmatprep.subr.bf16.mxu1 %v5211_v54  ;;  %v5295_v52 = vld [vmem:[%s7443_s0 + $0x1ec] ss:$20 sps:$4 sm:$0xff]   ;;  %v5293_v54 = vld [vmem:[%s7443_s0 + $0x1e8] ss:$20 sps:$4 sm:$0xff]  }
  0x40   : > { %4474 = vmatprep.mubr.msk.bf16.mxu0 %vm636_vm0, %v5809_v55  ;;  %4478 = vmatprep.mubr.msk.bf16.mxu1 %vm636_vm0, %v5809_v55 }
  0x42   : > { %798 = vmatpush1.bf16.msra.mxu0 %v5212_v57  ;;  %1344 = vmatpush1.bf16.msra.mxu1 %v5209_v56  ;;  %v5296_v56 = vld [vmem:[%s7443_s0 + $0x1f0] ss:$20 sps:$4 sm:$0xff]  }
  0x43   : > { %799 = vmatprep.subr.bf16.mxu0 %v7448_v53  ;;  %1345 = vmatprep.subr.bf16.mxu1 %v5215_v58  ;;  %v5299_v57 = vld [vmem:[%s7443_s0 + $0x3a4] ss:$20 sps:$4 sm:$0xff]   ;;  %v5297_v58 = vld [vmem:[%s7443_s0 + $0x3a0] ss:$20 sps:$4 sm:$0xff]  }
  0x45   : > { %692 = vmatmul.mubr.bf16.gmra.mxu0 %v5831_v60  ;;  %765 = vmatmul.mubr.bf16.gmra.mxu1 %v5831_v60 }
  0x46   : > { %800 = vmatpush1.bf16.msra.mxu0 %v5216_v61  ;;  %1346 = vmatpush1.bf16.msra.mxu1 %v5213_v59  ;;  %v5300_v59 = vld [vmem:[%s7443_s0 + $0x3a8] ss:$20 sps:$4 sm:$0xff]  }
  0x47   : > { %801 = vmatprep.subr.bf16.mxu0 %v7448_v53  ;;  %1347 = vmatprep.subr.bf16.mxu1 %v5219_v62  ;;  %v5303_v61 = vld [vmem:[%s7443_s0 + $0x37c] ss:$20 sps:$4 sm:$0xff]   ;;  %v5304_v62 = vld [vmem:[%s7443_s0 + $0x380] ss:$20 sps:$4 sm:$0xff]  }
  0x48   : > { %4475 = vmatprep.mubr.msk.bf16.mxu0 %vm636_vm0, %v5841_v63  ;;  %4479 = vmatprep.mubr.msk.bf16.mxu1 %vm636_vm0, %v5841_v63 }
  0x4a   : > { %802 = vmatpush1.bf16.msra.mxu0 %v5220_v1  ;;  %1348 = vmatpush1.bf16.msra.mxu1 %v5217_v0  ;;  %v5307_v0 = vld [vmem:[%s7443_s0 + $0x354] ss:$20 sps:$4 sm:$0xff]   ;;  %v5305_v1 = vld [vmem:[%s7443_s0 + $0x350] ss:$20 sps:$4 sm:$0xff]  }
  0x4b   : > { %803 = vmatprep.subr.bf16.mxu0 %v7448_v53  ;;  %1349 = vmatprep.subr.bf16.mxu1 %v5223_v2  ;;  %v5308_v2 = vld [vmem:[%s7443_s0 + $0x358] ss:$20 sps:$4 sm:$0xff]  }
  0x4d   : > { %702 = vmatmul.mubr.bf16.gmra.mxu0 %v5863_v4  ;;  %775 = vmatmul.mubr.bf16.gmra.mxu1 %v5863_v4 }
  0x4e   : > { %804 = vmatpush1.bf16.msra.mxu0 %v5224_v5  ;;  %1350 = vmatpush1.bf16.msra.mxu1 %v5221_v3  ;;  %v5311_v3 = vld [vmem:[%s7443_s0 + $0x32c] ss:$20 sps:$4 sm:$0xff]   ;;  %v5309_v5 = vld [vmem:[%s7443_s0 + $0x328] ss:$20 sps:$4 sm:$0xff]  }
  0x4f   : > { %805 = vmatprep.subr.bf16.mxu0 %v7448_v53  ;;  %1351 = vmatprep.subr.bf16.mxu1 %v5230_v6  ;;  %v5312_v6 = vld [vmem:[%s7443_s0 + $0x330] ss:$20 sps:$4 sm:$0xff]  }
  0x50   : > { %4476 = vmatprep.mubr.msk.bf16.mxu0 %vm636_vm0, %v5873_v7  ;;  %4480 = vmatprep.mubr.msk.bf16.mxu1 %vm636_vm0, %v5873_v7 }
  0x52   : > { %806 = vmatpush1.bf16.msra.mxu0 %v5231_v9  ;;  %1352 = vmatpush1.bf16.msra.mxu1 %v5228_v8  ;;  %v5315_v8 = vld [vmem:[%s7443_s0 + $0x4dc] ss:$20 sps:$4 sm:$0xff]   ;;  %v5318_v9 = vld [vmem:[%s7443_s0 + $0x4e4] ss:$20 sps:$4 sm:$0xff]  }
  0x53   : > { %807 = vmatprep.subr.bf16.mxu0 %v7448_v53  ;;  %1353 = vmatprep.subr.bf16.mxu1 %v5234_v10  ;;  %v5313_v10 = vld [vmem:[%s7443_s0 + $0x4d8] ss:$20 sps:$4 sm:$0xff]  }
  0x55   : > { %712 = vmatmul.mubr.bf16.gmra.mxu0 %v5895_v12  ;;  %785 = vmatmul.mubr.bf16.gmra.mxu1 %v5895_v12 }
  0x56   : > { %808 = vmatpush1.bf16.msra.mxu0 %v5235_v13  ;;  %1354 = vmatpush1.bf16.msra.mxu1 %v5232_v11  ;;  %v5316_v11 = vld [vmem:[%s7443_s0 + $0x4e0] ss:$20 sps:$4 sm:$0xff]  }
  0x57   : > { %809 = vmatprep.subr.bf16.mxu0 %v7448_v53  ;;  %1355 = vmatprep.subr.bf16.mxu1 %v5241_v14  ;;  %v5321_v13 = vld [vmem:[%s7443_s0 + $0x4b4] ss:$20 sps:$4 sm:$0xff]   ;;  %v5324_v14 = vld [vmem:[%s7443_s0 + $0x4bc] ss:$20 sps:$4 sm:$0xff]  }
  0x58   : > { %4481 = vmatprep.mubr.msk.bf16.mxu0 %vm636_vm0, %v5753_v37  ;;  %4625 = vmatprep.mubr.msk.bf16.mxu1 %vm636_vm0, %v5809_v55  ;;  %v5273_v37 = vld [vmem:[%s7443_s0 + $0x2b8] ss:$20 sps:$4 sm:$0xff]  }
  0x5a   : > { %810 = vmatpush1.bf16.msra.mxu0 %v5242_v16  ;;  %1356 = vmatpush1.bf16.msra.mxu1 %v5239_v15  ;;  %v5319_v15 = vld [vmem:[%s7443_s0 + $0x4b0] ss:$20 sps:$4 sm:$0xff]   ;;  %v5322_v16 = vld [vmem:[%s7443_s0 + $0x4b8] ss:$20 sps:$4 sm:$0xff]  }
  0x5b   : > { %819 = vmatprep.subr.bf16.mxu0 %v7448_v53  ;;  %1365 = vmatprep.subr.bf16.mxu1 %v5245_v17  ;;  %v5327_v17 = vld [vmem:[%s7443_s0 + $0x48c] ss:$20 sps:$4 sm:$0xff]  }
  0x5e   : > { %820 = vmatpush2.bf16.msra.mxu0 %v5246_v19  ;;  %1366 = vmatpush2.bf16.msra.mxu1 %v5243_v18  ;;  %v5325_v18 = vld [vmem:[%s7443_s0 + $0x488] ss:$20 sps:$4 sm:$0xff]   ;;  %v5328_v19 = vld [vmem:[%s7443_s0 + $0x490] ss:$20 sps:$4 sm:$0xff]  }
  0x5f   : > { %821 = vmatprep.subr.bf16.mxu0 %v7448_v53  ;;  %1367 = vmatprep.subr.bf16.mxu1 %v5252_v20  ;;  %v5333_v20 = vld [vmem:[%s7443_s0 + $0x464] ss:$20 sps:$4 sm:$0xff]  }
  0x62   : > { %822 = vmatpush2.bf16.msra.mxu0 %v5253_v22  ;;  %1368 = vmatpush2.bf16.msra.mxu1 %v5250_v21  ;;  %v5336_v21 = vld [vmem:[%s7443_s0 + $0x46c] ss:$20 sps:$4 sm:$0xff]  }
  0x63   : > { %823 = vmatprep.subr.bf16.mxu0 %v7448_v53  ;;  %1369 = vmatprep.subr.bf16.mxu1 %v5256_v23  ;;  %v5331_v22 = vld [vmem:[%s7443_s0 + $0x460] ss:$20 sps:$4 sm:$0xff]   ;;  %v5334_v23 = vld [vmem:[%s7443_s0 + $0x468] ss:$20 sps:$4 sm:$0xff]  }
  0x66   : > { %824 = vmatpush2.bf16.msra.mxu0 %v5257_v25  ;;  %1370 = vmatpush2.bf16.msra.mxu1 %v5254_v24  ;;  %v5339_v24 = vld [vmem:[%s7443_s0 + $0x43c] ss:$20 sps:$4 sm:$0xff]   ;;  %v5342_v25 = vld [vmem:[%s7443_s0 + $0x444] ss:$20 sps:$4 sm:$0xff]  }
  0x67   : > { %825 = vmatprep.subr.bf16.mxu0 %v7448_v53  ;;  %1371 = vmatprep.subr.bf16.mxu1 %v5260_v26  ;;  %v5337_v26 = vld [vmem:[%s7443_s0 + $0x438] ss:$20 sps:$4 sm:$0xff]  }
  0x6a   : > { %826 = vmatpush2.bf16.msra.mxu0 %v5261_v28  ;;  %1372 = vmatpush2.bf16.msra.mxu1 %v5258_v27  ;;  %v5340_v27 = vld [vmem:[%s7443_s0 + $0x440] ss:$20 sps:$4 sm:$0xff]  }
  0x6b   : > { %1414 = vmatprep.subr.bf16.mxu0 %v5264_v29  ;;  %1487 = vmatprep.subr.bf16.mxu1 %v7448_v53  ;;  %v5345_v28 = vld [vmem:[%s7443_s0 + $0x414] ss:$20 sps:$4 sm:$0xff]   ;;  %v5348_v29 = vld [vmem:[%s7443_s0 + $0x41c] ss:$20 sps:$4 sm:$0xff]  }
  0x6d   : > { %828 = vmatmul.mubr.bf16.vlgmr.msra.gmra.mxu0 %v5796_v50  ;;  %1374 = vmatmul.mubr.bf16.vlgmr.msra.gmra.mxu1 %v5831_v60  ;;  %v5289_v50 = vld [vmem:[%s7443_s0 + $0x210] ss:$20 sps:$4 sm:$0xff]  }
  0x6e   : > { %1415 = vmatpush1.bf16.msra.mxu0 %v5262_v30  ;;  %1488 = vmatpush1.bf16.msra.mxu1 %v5265_v31  ;;  %v5343_v30 = vld [vmem:[%s7443_s0 + $0x410] ss:$20 sps:$4 sm:$0xff]   ;;  %v5346_v31 = vld [vmem:[%s7443_s0 + $0x418] ss:$20 sps:$4 sm:$0xff]  }
  0x6f   : > { %1416 = vmatprep.subr.bf16.mxu0 %v5268_v32  ;;  %1489 = vmatprep.subr.bf16.mxu1 %v7448_v53  ;;  %v5351_v32 = vld [vmem:[%s7443_s0 + $0x3ec] ss:$20 sps:$4 sm:$0xff]  }
  0x70   : > { %4626 = vmatprep.mubr.msk.bf16.mxu1 %vm636_vm0, %v5841_v63  ;;  %4482 = vmatprep.mubr.msk.bf16.mxu0 %vm636_vm0, %v5809_v55 }
  0x72   : > { %1417 = vmatpush1.bf16.msra.mxu0 %v5266_v33  ;;  %1490 = vmatpush1.bf16.msra.mxu1 %v5269_v34  ;;  %v5354_v33 = vld [vmem:[%s7443_s0 + $0x3f4] ss:$20 sps:$4 sm:$0xff]  }
  0x73   : > { %1418 = vmatprep.subr.bf16.mxu0 %v5272_v35  ;;  %1491 = vmatprep.subr.bf16.mxu1 %v7448_v53  ;;  %v5349_v34 = vld [vmem:[%s7443_s0 + $0x3e8] ss:$20 sps:$4 sm:$0xff]   ;;  %v5352_v35 = vld [vmem:[%s7443_s0 + $0x3f0] ss:$20 sps:$4 sm:$0xff]  }
  0x75   : > { %1384 = vmatmul.mubr.bf16.gmra.mxu1 %v5863_v4  ;;  %836 = vmatmul.mubr.bf16.gmra.mxu0 %v5831_v60 }
  0x76   : > { %1419 = vmatpush1.bf16.msra.mxu0 %v5270_v36  ;;  %1492 = vmatpush1.bf16.msra.mxu1 %v5273_v37  ;;  %v5357_v36 = vld [vmem:[%s7443_s0 + $0x3c4] ss:$20 sps:$4 sm:$0xff]   ;;  %v5360_v37 = vld [vmem:[%s7443_s0 + $0x3cc] ss:$20 sps:$4 sm:$0xff]  }
  0x77   : > { %1420 = vmatprep.subr.bf16.mxu0 %v5276_v38  ;;  %1493 = vmatprep.subr.bf16.mxu1 %v7448_v53  ;;  %v5355_v38 = vld [vmem:[%s7443_s0 + $0x3c0] ss:$20 sps:$4 sm:$0xff]  }
  0x78   : > { %4627 = vmatprep.mubr.msk.bf16.mxu1 %vm636_vm0, %v5873_v7  ;;  %4483 = vmatprep.mubr.msk.bf16.mxu0 %vm636_vm0, %v5841_v63 }
  0x7a   : > { %1421 = vmatpush1.bf16.msra.mxu0 %v5274_v39  ;;  %1494 = vmatpush1.bf16.msra.mxu1 %v5277_v40  ;;  %v5358_v39 = vld [vmem:[%s7443_s0 + $0x3c8] ss:$20 sps:$4 sm:$0xff]  }
  0x7b   : > { %1422 = vmatprep.subr.bf16.mxu0 %v5280_v41  ;;  %1495 = vmatprep.subr.bf16.mxu1 %v7448_v53  ;;  %v5363_v40 = vld [vmem:[%s7443_s0 + $0x57c] ss:$20 sps:$4 sm:$0xff]   ;;  %v5366_v41 = vld [vmem:[%s7443_s0 + $0x584] ss:$20 sps:$4 sm:$0xff]  }
  0x7d   : > { %1394 = vmatmul.mubr.bf16.gmra.mxu1 %v5895_v12  ;;  %844 = vmatmul.mubr.bf16.gmra.mxu0 %v5863_v4 }
  0x7e   : > { %1423 = vmatpush1.bf16.msra.mxu0 %v5278_v42  ;;  %1496 = vmatpush1.bf16.msra.mxu1 %v5281_v43  ;;  %v5361_v42 = vld [vmem:[%s7443_s0 + $0x578] ss:$20 sps:$4 sm:$0xff]   ;;  %v5364_v43 = vld [vmem:[%s7443_s0 + $0x580] ss:$20 sps:$4 sm:$0xff]  }
  0x7f   : > { %1424 = vmatprep.subr.bf16.mxu0 %v5284_v44  ;;  %1497 = vmatprep.subr.bf16.mxu1 %v7448_v53  ;;  %v5369_v44 = vld [vmem:[%s7443_s0 + $0x554] ss:$20 sps:$4 sm:$0xff]  }
  0x80   : > { %4628 = vmatprep.mubr.msk.bf16.mxu1 %vm636_vm0, %v6023_v45  ;;  %4484 = vmatprep.mubr.msk.bf16.mxu0 %vm636_vm0, %v5873_v7 }
  0x82   : > { %1425 = vmatpush1.bf16.msra.mxu0 %v5282_v46  ;;  %1498 = vmatpush1.bf16.msra.mxu1 %v5285_v47  ;;  %v5372_v46 = vld [vmem:[%s7443_s0 + $0x55c] ss:$20 sps:$4 sm:$0xff]   ;;  %v5370_v47 = vld [vmem:[%s7443_s0 + $0x558] ss:$20 sps:$4 sm:$0xff]  }
  0x83   : > { %1426 = vmatprep.subr.bf16.mxu0 %v5291_v48  ;;  %1499 = vmatprep.subr.bf16.mxu1 %v7448_v53  ;;  %v5375_v48 = vld [vmem:[%s7443_s0 + $0x52c] ss:$20 sps:$4 sm:$0xff]  }
  0x85   : > { %1404 = vmatmul.mubr.bf16.gmra.mxu1 %v6042_v49  ;;  %852 = vmatmul.mubr.bf16.gmra.mxu0 %v5895_v12 }
  0x86   : > { %1427 = vmatpush1.bf16.msra.mxu0 %v5289_v50  ;;  %1500 = vmatpush1.bf16.msra.mxu1 %v5292_v51  ;;  %v5378_v50 = vld [vmem:[%s7443_s0 + $0x534] ss:$20 sps:$4 sm:$0xff]  }
  0x87   : > { %1428 = vmatprep.subr.bf16.mxu0 %v5295_v52  ;;  %1501 = vmatprep.subr.bf16.mxu1 %v7448_v53  ;;  %v5373_v51 = vld [vmem:[%s7443_s0 + $0x528] ss:$20 sps:$4 sm:$0xff]   ;;  %v5376_v52 = vld [vmem:[%s7443_s0 + $0x530] ss:$20 sps:$4 sm:$0xff]  }
  0x88   : > { %4629 = vmatprep.mubr.msk.bf16.mxu0 %vm636_vm0, %v5809_v55  ;;  %4633 = vmatprep.mubr.msk.bf16.mxu1 %vm636_vm0, %v5809_v55  ;;  %v5301_v55 = vld [vmem:[%s7443_s0 + $0x378] ss:$20 sps:$4 sm:$0xff]  }
  0x8a   : > { %1429 = vmatpush1.bf16.msra.mxu0 %v5293_v54  ;;  %1502 = vmatpush1.bf16.msra.mxu1 %v5296_v56  ;;  %v5381_v54 = vld [vmem:[%s7443_s0 + $0x504] ss:$20 sps:$4 sm:$0xff]   ;;  %v5384_v56 = vld [vmem:[%s7443_s0 + $0x50c] ss:$20 sps:$4 sm:$0xff]  }
  0x8b   : > { %1438 = vmatprep.subr.bf16.mxu0 %v5299_v57  ;;  %1511 = vmatprep.subr.bf16.mxu1 %v7448_v53  ;;  %v5379_v57 = vld [vmem:[%s7443_s0 + $0x500] ss:$20 sps:$4 sm:$0xff]  }
  0x8e   : > { %1439 = vmatpush2.bf16.msra.mxu0 %v5297_v58  ;;  %1512 = vmatpush2.bf16.msra.mxu1 %v5300_v59  ;;  %v5382_v58 = vld [vmem:[%s7443_s0 + $0x508] ss:$20 sps:$4 sm:$0xff]  }
  0x8f   : > { %1440 = vmatprep.subr.bf16.mxu0 %v5303_v61  ;;  %1513 = vmatprep.subr.bf16.mxu1 %v7448_v53  ;;  %v5387_v59 = vld [vmem:[%s7443_s0 + $0x6bc] ss:$20 sps:$4 sm:$0xff]   ;;  %v5385_v61 = vld [vmem:[%s7443_s0 + $0x6b8] ss:$20 sps:$4 sm:$0xff]  }
  0x92   : > { %1441 = vmatpush2.bf16.msra.mxu0 %v5301_v55  ;;  %1514 = vmatpush2.bf16.msra.mxu1 %v5304_v62  ;;  %v5388_v55 = vld [vmem:[%s7443_s0 + $0x4e8] ss:$20 sps:$4 sm:$0xff]  }
  0x93   : > { %1442 = vmatprep.subr.bf16.mxu0 %v5307_v0  ;;  %1515 = vmatprep.subr.bf16.mxu1 %v7448_v53  ;;  %v5391_v62 = vld [vmem:[%s7443_s0 + $0x694] ss:$20 sps:$4 sm:$0xff]   ;;  %v5389_v0 = vld [vmem:[%s7443_s0 + $0x690] ss:$20 sps:$4 sm:$0xff]  }
  0x96   : > { %1443 = vmatpush2.bf16.msra.mxu0 %v5305_v1  ;;  %1516 = vmatpush2.bf16.msra.mxu1 %v5308_v2  ;;  %v5392_v1 = vld [vmem:[%s7443_s0 + $0x4c0] ss:$20 sps:$4 sm:$0xff]  }
  0x97   : > { %1444 = vmatprep.subr.bf16.mxu0 %v5311_v3  ;;  %1517 = vmatprep.subr.bf16.mxu1 %v7448_v53  ;;  %v5395_v2 = vld [vmem:[%s7443_s0 + $0x66c] ss:$20 sps:$4 sm:$0xff]  }
  0x98   : > { %v5396_v3 = vld [vmem:[%s7443_s0 + $0x498] ss:$20 sps:$4 sm:$0xff]  }
  0x9a   : > { %1445 = vmatpush2.bf16.msra.mxu0 %v5309_v5  ;;  %1518 = vmatpush2.bf16.msra.mxu1 %v5312_v6  ;;  %v5399_v5 = vld [vmem:[%s7443_s0 + $0x644] ss:$20 sps:$4 sm:$0xff]  }
  0x9b   : > { %2113 = vmatprep.subr.bf16.mxu0 %v5315_v8  ;;  %2186 = vmatprep.subr.bf16.mxu1 %v5318_v9  ;;  %v5400_v6 = vld [vmem:[%s7443_s0 + $0x470] ss:$20 sps:$4 sm:$0xff]   ;;  %v5404_v9 = vld [vmem:[%s7443_s0 + $0x448] ss:$20 sps:$4 sm:$0xff]  }
  0x9c   : > { %v5403_v8 = vld [vmem:[%s7443_s0 + $0x61c] ss:$20 sps:$4 sm:$0xff]  }
  0x9d   : > { %1447 = vmatmul.mubr.bf16.vlgmr.msra.gmra.mxu0 %v5831_v60  ;;  %1520 = vmatmul.mubr.bf16.vlgmr.msra.gmra.mxu1 %v5831_v60  ;;  %v5330_v60 = vld [vmem:[%s7443_s0 + $0x494] ss:$20 sps:$4 sm:$0xff]  }
  0x9e   : > { %2114 = vmatpush1.bf16.msra.mxu0 %v5313_v10  ;;  %2187 = vmatpush1.bf16.msra.mxu1 %v5316_v11  ;;  %v5407_v10 = vld [vmem:[%s7443_s0 + $0x5f4] ss:$20 sps:$4 sm:$0xff]  }
  0x9f   : > { %2115 = vmatprep.subr.bf16.mxu0 %v5321_v13  ;;  %2188 = vmatprep.subr.bf16.mxu1 %v5324_v14  ;;  %v6341_v11 = vld [vmem:[%s5741_s14 + $0x54] ss:$8 sps:$4 sm:$0xff]   ;;  %v5405_v13 = vld [vmem:[%s7443_s0 + $0x5f0] ss:$20 sps:$4 sm:$0xff]  }
  0xa0   : > { %4630 = vmatprep.mubr.msk.bf16.mxu0 %vm636_vm0, %v5841_v63  ;;  %4634 = vmatprep.mubr.msk.bf16.mxu1 %vm636_vm0, %v5841_v63  ;;  %v5408_v14 = vld [vmem:[%s7443_s0 + $0x420] ss:$20 sps:$4 sm:$0xff]  }
  0xa2   : > { %2116 = vmatpush1.bf16.msra.mxu0 %v5319_v15  ;;  %2189 = vmatpush1.bf16.msra.mxu1 %v5322_v16  ;;  %v5414_v15 = vld [vmem:[%s7443_s0 + $0x5cc] ss:$20 sps:$4 sm:$0xff]   ;;  %v6360_v16 = vld [vmem:[%s5741_s14 + $0x50] ss:$8 sps:$4 sm:$0xff]  }
  0xa3   : > { %2117 = vmatprep.subr.bf16.mxu0 %v5327_v17  ;;  %2190 = vmatprep.subr.bf16.mxu1 %v5330_v60  ;;  %v5412_v17 = vld [vmem:[%s7443_s0 + $0x5c8] ss:$20 sps:$4 sm:$0xff]   ;;  %v5415_v60 = vld [vmem:[%s7443_s0 + $0x3f8] ss:$20 sps:$4 sm:$0xff]  }
  0xa5   : > { %1457 = vmatmul.mubr.bf16.gmra.mxu0 %v5863_v4  ;;  %1528 = vmatmul.mubr.bf16.gmra.mxu1 %v5863_v4 }
  0xa6   : > { %2118 = vmatpush1.bf16.msra.mxu0 %v5325_v18  ;;  %2191 = vmatpush1.bf16.msra.mxu1 %v5328_v19  ;;  %v5418_v18 = vld [vmem:[%s7443_s0 + $0x5a4] ss:$20 sps:$4 sm:$0xff]   ;;  %v6373_v19 = vld [vmem:[%s5741_s14 + $0x34] ss:$8 sps:$4 sm:$0xff]  }
  0xa7   : > { %2119 = vmatprep.subr.bf16.mxu0 %v5333_v20  ;;  %2192 = vmatprep.subr.bf16.mxu1 %v5336_v21  ;;  %v5416_v20 = vld [vmem:[%s7443_s0 + $0x5a0] ss:$20 sps:$4 sm:$0xff]   ;;  %v5419_v21 = vld [vmem:[%s7443_s0 + $0x3d0] ss:$20 sps:$4 sm:$0xff]  }
  0xa8   : > { %4631 = vmatprep.mubr.msk.bf16.mxu0 %vm636_vm0, %v5873_v7  ;;  %4635 = vmatprep.mubr.msk.bf16.mxu1 %vm636_vm0, %v5873_v7 }
  0xaa   : > { %2120 = vmatpush1.bf16.msra.mxu0 %v5331_v22  ;;  %2193 = vmatpush1.bf16.msra.mxu1 %v5334_v23  ;;  %v5422_v22 = vld [vmem:[%s7443_s0 + $0x75c] ss:$20 sps:$4 sm:$0xff]   ;;  %v5583_v23 = vld [vmem:[%s5741_s14 + $0x24] ss:$8 sps:$4 sm:$0xff]  }
  0xab   : > { %2121 = vmatprep.subr.bf16.mxu0 %v5339_v24  ;;  %2194 = vmatprep.subr.bf16.mxu1 %v5342_v25  ;;  %v5420_v24 = vld [vmem:[%s7443_s0 + $0x758] ss:$20 sps:$4 sm:$0xff]   ;;  %v5423_v25 = vld [vmem:[%s7443_s0 + $0x588] ss:$20 sps:$4 sm:$0xff]  }
  0xad   : > { %1467 = vmatmul.mubr.bf16.gmra.mxu0 %v5895_v12  ;;  %1536 = vmatmul.mubr.bf16.gmra.mxu1 %v5895_v12 }
  0xae   : > { %2122 = vmatpush1.bf16.msra.mxu0 %v5337_v26  ;;  %2195 = vmatpush1.bf16.msra.mxu1 %v5340_v27  ;;  %v5426_v26 = vld [vmem:[%s7443_s0 + $0x734] ss:$20 sps:$4 sm:$0xff]   ;;  %v5424_v27 = vld [vmem:[%s7443_s0 + $0x730] ss:$20 sps:$4 sm:$0xff]  }
  0xaf   : > { %2123 = vmatprep.subr.bf16.mxu0 %v5345_v28  ;;  %2196 = vmatprep.subr.bf16.mxu1 %v5348_v29  ;;  %v5427_v28 = vld [vmem:[%s7443_s0 + $0x560] ss:$20 sps:$4 sm:$0xff]  }
  0xb0   : > { %4632 = vmatprep.mubr.msk.bf16.mxu0 %vm636_vm0, %v6023_v45  ;;  %4636 = vmatprep.mubr.msk.bf16.mxu1 %vm636_vm0, %v6023_v45  ;;  %v5430_v29 = vld [vmem:[%s7443_s0 + $0x70c] ss:$20 sps:$4 sm:$0xff]  }
  0xb2   : > { %2124 = vmatpush1.bf16.msra.mxu0 %v5343_v30  ;;  %2197 = vmatpush1.bf16.msra.mxu1 %v5346_v31  ;;  %v5428_v30 = vld [vmem:[%s7443_s0 + $0x708] ss:$20 sps:$4 sm:$0xff]   ;;  %v5431_v31 = vld [vmem:[%s7443_s0 + $0x538] ss:$20 sps:$4 sm:$0xff]  }
  0xb3   : > { %2125 = vmatprep.subr.bf16.mxu0 %v5351_v32  ;;  %2198 = vmatprep.subr.bf16.mxu1 %v5354_v33  ;;  %v5434_v32 = vld [vmem:[%s7443_s0 + $0x6e4] ss:$20 sps:$4 sm:$0xff]   ;;  %v5432_v33 = vld [vmem:[%s7443_s0 + $0x6e0] ss:$20 sps:$4 sm:$0xff]  }
  0xb5   : > { %1477 = vmatmul.mubr.bf16.gmra.mxu0 %v6042_v49  ;;  %1544 = vmatmul.mubr.bf16.gmra.mxu1 %v6042_v49 }
  0xb6   : > { %2126 = vmatpush1.bf16.msra.mxu0 %v5349_v34  ;;  %2199 = vmatpush1.bf16.msra.mxu1 %v5352_v35  ;;  %v5435_v34 = vld [vmem:[%s7443_s0 + $0x510] ss:$20 sps:$4 sm:$0xff]  }
  0xb7   : > { %2127 = vmatprep.subr.bf16.mxu0 %v5357_v36  ;;  %2200 = vmatprep.subr.bf16.mxu1 %v5360_v37  ;;  %v5441_v35 = vld [vmem:[%s7443_s0 + $0x6c4] ss:$20 sps:$4 sm:$0xff]   ;;  %v5439_v37 = vld [vmem:[%s7443_s0 + $0x6c0] ss:$20 sps:$4 sm:$0xff]  }
  0xb8   : > { %4777 = vmatprep.mubr.msk.bf16.mxu0 %vm636_vm0, %v5841_v63  ;;  %4781 = vmatprep.mubr.msk.bf16.mxu1 %vm636_vm0, %v5841_v63  ;;  %v5367_v63 = vld [vmem:[%s7443_s0 + $0x550] ss:$20 sps:$4 sm:$0xff]  }
  0xb9   : > { %v6432_v36 = vld [vmem:[%s5741_s14 + $0x30] ss:$8 sps:$4 sm:$0xff]  }
  0xba   : > { %2128 = vmatpush1.bf16.msra.mxu0 %v5355_v38  ;;  %2201 = vmatpush1.bf16.msra.mxu1 %v5358_v39  ;;  %v5442_v38 = vld [vmem:[%s7443_s0 + $0x6c8] ss:$20 sps:$4 sm:$0xff]  }
  0xbb   : > { %2137 = vmatprep.subr.bf16.mxu0 %v5363_v40  ;;  %2210 = vmatprep.subr.bf16.mxu1 %v5366_v41  ;;  %v5445_v39 = vld [vmem:[%s7443_s0 + $0x69c] ss:$20 sps:$4 sm:$0xff]  }
  0xbe   : > { %2138 = vmatpush2.bf16.msra.mxu0 %v5361_v42  ;;  %2211 = vmatpush2.bf16.msra.mxu1 %v5364_v43  ;;  %v5584_v42 = vld [vmem:[%s5741_s14 + $0x20] ss:$8 sps:$4 sm:$0xff]   ;;  %v5443_v43 = vld [vmem:[%s7443_s0 + $0x698] ss:$20 sps:$4 sm:$0xff]  }
  0xbf   : > { %2139 = vmatprep.subr.bf16.mxu0 %v5369_v44  ;;  %2212 = vmatprep.subr.bf16.mxu1 %v5372_v46  ;;  %v5446_v44 = vld [vmem:[%s7443_s0 + $0x6a0] ss:$20 sps:$4 sm:$0xff]  }
  0xc2   : > { %2140 = vmatpush2.bf16.msra.mxu0 %v5367_v63  ;;  %2213 = vmatpush2.bf16.msra.mxu1 %v5370_v47  ;;  %v5449_v47 = vld [vmem:[%s7443_s0 + $0x674] ss:$20 sps:$4 sm:$0xff]  }
  0xc3   : > { %2141 = vmatprep.subr.bf16.mxu0 %v5375_v48  ;;  %2214 = vmatprep.subr.bf16.mxu1 %v5378_v50  ;;  %v5585_v48 = vld [vmem:[%s5741_s14 + $0x34] ss:$8 sps:$4 sm:$0xff]  }
  0xc6   : > { %2142 = vmatpush2.bf16.msra.mxu0 %v5373_v51  ;;  %2215 = vmatpush2.bf16.msra.mxu1 %v5376_v52  ;;  %v5447_v52 = vld [vmem:[%s7443_s0 + $0x670] ss:$20 sps:$4 sm:$0xff]  }
  0xc7   : > { %2143 = vmatprep.subr.bf16.mxu0 %v5381_v54  ;;  %2216 = vmatprep.subr.bf16.mxu1 %v5384_v56  ;;  %v5450_v54 = vld [vmem:[%s7443_s0 + $0x678] ss:$20 sps:$4 sm:$0xff]  }
  0xca   : > { %2144 = vmatpush2.bf16.msra.mxu0 %v5379_v57  ;;  %2217 = vmatpush2.bf16.msra.mxu1 %v5382_v58  ;;  %v5586_v58 = vld [vmem:[%s5741_s14 + $0x30] ss:$8 sps:$4 sm:$0xff]  }
  0xcb   : > { %2259 = vmatprep.subr.bf16.mxu0 %v7448_v53  ;;  %2885 = vmatprep.subr.bf16.mxu1 %v5387_v59 }
  0xcd   : > { %2146 = vmatmul.mubr.bf16.vlgmr.msra.gmra.mxu0 %v5863_v4  ;;  %2219 = vmatmul.mubr.bf16.vlgmr.msra.gmra.mxu1 %v5863_v4  ;;  %v5393_v4 = vld [vmem:[%s7443_s0 + $0x668] ss:$20 sps:$4 sm:$0xff]  }
  0xce   : > { %2260 = vmatpush1.bf16.msra.mxu0 %v5388_v55  ;;  %2886 = vmatpush1.bf16.msra.mxu1 %v5385_v61  ;;  %v5451_v55 = vld [vmem:[%s7443_s0 + $0x648] ss:$20 sps:$4 sm:$0xff]  }
  0xcf   : > { %2261 = vmatprep.subr.bf16.mxu0 %v7448_v53  ;;  %2887 = vmatprep.subr.bf16.mxu1 %v5391_v62  ;;  %v5454_v62 = vld [vmem:[%s7443_s0 + $0x650] ss:$20 sps:$4 sm:$0xff]  }
  0xd0   : > { %4778 = vmatprep.mubr.msk.bf16.mxu0 %vm636_vm0, %v5873_v7  ;;  %4782 = vmatprep.mubr.msk.bf16.mxu1 %vm636_vm0, %v5873_v7  ;;  %v5397_v7 = vld [vmem:[%s7443_s0 + $0x640] ss:$20 sps:$4 sm:$0xff]  }
  0xd2   : > { %2262 = vmatpush1.bf16.msra.mxu0 %v5392_v1  ;;  %2888 = vmatpush1.bf16.msra.mxu1 %v5389_v0 }
  0xd3   : > { %2263 = vmatprep.subr.bf16.mxu0 %v7448_v53  ;;  %2889 = vmatprep.subr.bf16.mxu1 %v5395_v2  ;;  %v6507_v2 = vld [vmem:[%s5741_s14 + $0x44] ss:$8 sps:$4 sm:$0xff]  }
  0xd5   : > { %2156 = vmatmul.mubr.bf16.gmra.mxu0 %v5895_v12  ;;  %2229 = vmatmul.mubr.bf16.gmra.mxu1 %v5895_v12  ;;  %v5401_v12 = vld [vmem:[%s7443_s0 + $0x618] ss:$20 sps:$4 sm:$0xff]  }
  0xd6   : > { %2264 = vmatpush1.bf16.msra.mxu0 %v5396_v3  ;;  %2890 = vmatpush1.bf16.msra.mxu1 %v5393_v4 }
  0xd7   : > { %2265 = vmatprep.subr.bf16.mxu0 %v7448_v53  ;;  %2891 = vmatprep.subr.bf16.mxu1 %v5399_v5  ;;  %v5455_v5 = vld [vmem:[%s7443_s0 + $0x620] ss:$20 sps:$4 sm:$0xff]  }
  0xd8   : > { %4779 = vmatprep.mubr.msk.bf16.mxu0 %vm636_vm0, %v6023_v45  ;;  %4783 = vmatprep.mubr.msk.bf16.mxu1 %vm636_vm0, %v6023_v45 }
  0xda   : > { %2266 = vmatpush1.bf16.msra.mxu0 %v5400_v6  ;;  %2892 = vmatpush1.bf16.msra.mxu1 %v5397_v7  ;;  %v5458_v7 = vld [vmem:[%s7443_s0 + $0x628] ss:$20 sps:$4 sm:$0xff]  }
  0xdb   : > { %2267 = vmatprep.subr.bf16.mxu0 %v7448_v53  ;;  %2893 = vmatprep.subr.bf16.mxu1 %v5403_v8  ;;  %v5461_v6 = vld [vmem:[%s7443_s0 + $0x5fc] ss:$20 sps:$4 sm:$0xff]  }
  0xdd   : > { %2166 = vmatmul.mubr.bf16.gmra.mxu0 %v6042_v49  ;;  %2239 = vmatmul.mubr.bf16.gmra.mxu1 %v6042_v49 }
  0xde   : > { %2268 = vmatpush1.bf16.msra.mxu0 %v5404_v9  ;;  %2894 = vmatpush1.bf16.msra.mxu1 %v5401_v12  ;;  %v6532_v9 = vld [vmem:[%s5741_s14 + $0x64] ss:$8 sps:$4 sm:$0xff]  }
  0xdf   : > { %2269 = vmatprep.subr.bf16.mxu0 %v7448_v53  ;;  %2895 = vmatprep.subr.bf16.mxu1 %v5407_v10  ;;  %v6535_v10 = vld [vmem:[%s5741_s14 + $0x40] ss:$8 sps:$4 sm:$0xff]  }
  0xe0   : > { %4780 = vmatprep.mubr.msk.bf16.mxu0 %vm636_vm0, %v6341_v11  ;;  %4784 = vmatprep.mubr.msk.bf16.mxu1 %vm636_vm0, %v6341_v11 }
  0xe2   : > { %2270 = vmatpush1.bf16.msra.mxu0 %v5408_v14  ;;  %2896 = vmatpush1.bf16.msra.mxu1 %v5405_v13  ;;  %v5459_v13 = vld [vmem:[%s7443_s0 + $0x5f8] ss:$20 sps:$4 sm:$0xff]   ;;  %v5462_v14 = vld [vmem:[%s7443_s0 + $0x600] ss:$20 sps:$4 sm:$0xff]  }
  0xe3   : > { %2271 = vmatprep.subr.bf16.mxu0 %v7448_v53  ;;  %2897 = vmatprep.subr.bf16.mxu1 %v5414_v15  ;;  %v5468_v15 = vld [vmem:[%s7443_s0 + $0x5d4] ss:$20 sps:$4 sm:$0xff]  }
  0xe5   : > { %2176 = vmatmul.mubr.bf16.gmra.mxu0 %v6360_v16  ;;  %2249 = vmatmul.mubr.bf16.gmra.mxu1 %v6360_v16 }
  0xe6   : > { %2272 = vmatpush1.bf16.msra.mxu0 %v5415_v60  ;;  %2898 = vmatpush1.bf16.msra.mxu1 %v5412_v17 }
  0xe7   : > { %2273 = vmatprep.subr.bf16.mxu0 %v7448_v53  ;;  %2899 = vmatprep.subr.bf16.mxu1 %v5418_v18  ;;  %v6558_v18 = vld [vmem:[%s5741_s14 + $0x60] ss:$8 sps:$4 sm:$0xff]  }
  0xe8   : > { %4785 = vmatprep.mubr.msk.bf16.mxu0 %vm636_vm0, %v5583_v23  ;;  %4929 = vmatprep.mubr.msk.bf16.mxu1 %vm636_vm0, %v6373_v19 }
  0xea   : > { %2274 = vmatpush1.bf16.msra.mxu0 %v5419_v21  ;;  %2900 = vmatpush1.bf16.msra.mxu1 %v5416_v20  ;;  %v5466_v20 = vld [vmem:[%s7443_s0 + $0x5d0] ss:$20 sps:$4 sm:$0xff]   ;;  %v5469_v21 = vld [vmem:[%s7443_s0 + $0x5d8] ss:$20 sps:$4 sm:$0xff]  }
  0xeb   : > { %2283 = vmatprep.subr.bf16.mxu0 %v7448_v53  ;;  %2909 = vmatprep.subr.bf16.mxu1 %v5422_v22  ;;  %v5472_v22 = vld [vmem:[%s7443_s0 + $0x5ac] ss:$20 sps:$4 sm:$0xff]  }
  0xee   : > { %2284 = vmatpush2.bf16.msra.mxu0 %v5423_v25  ;;  %2910 = vmatpush2.bf16.msra.mxu1 %v5420_v24  ;;  %v5470_v25 = vld [vmem:[%s7443_s0 + $0x5a8] ss:$20 sps:$4 sm:$0xff]  }
  0xef   : > { %2285 = vmatprep.subr.bf16.mxu0 %v7448_v53  ;;  %2911 = vmatprep.subr.bf16.mxu1 %v5426_v26  ;;  %v5473_v26 = vld [vmem:[%s7443_s0 + $0x5b0] ss:$20 sps:$4 sm:$0xff]  }
  0xf2   : > { %2286 = vmatpush2.bf16.msra.mxu0 %v5427_v28  ;;  %2912 = vmatpush2.bf16.msra.mxu1 %v5424_v27 }
  0xf3   : > { %2287 = vmatprep.subr.bf16.mxu0 %v7448_v53  ;;  %2913 = vmatprep.subr.bf16.mxu1 %v5430_v29  ;;  %v5476_v29 = vld [vmem:[%s7443_s0 + $0x764] ss:$20 sps:$4 sm:$0xff]  }
  0xf6   : > { %2288 = vmatpush2.bf16.msra.mxu0 %v5431_v31  ;;  %2914 = vmatpush2.bf16.msra.mxu1 %v5428_v30  ;;  %v5474_v30 = vld [vmem:[%s7443_s0 + $0x760] ss:$20 sps:$4 sm:$0xff]   ;;  %v5477_v31 = vld [vmem:[%s7443_s0 + $0x768] ss:$20 sps:$4 sm:$0xff]  }
  0xf7   : > { %2289 = vmatprep.subr.bf16.mxu0 %v7448_v53  ;;  %2915 = vmatprep.subr.bf16.mxu1 %v5434_v32 }
  0xfa   : > { %2290 = vmatpush2.bf16.msra.mxu0 %v5435_v34  ;;  %2916 = vmatpush2.bf16.msra.mxu1 %v5432_v33  ;;  %v5478_v34 = vld [vmem:[%s7443_s0 + $0x738] ss:$20 sps:$4 sm:$0xff]  }
  0xfb   : > { %2958 = vmatprep.subr.bf16.mxu0 %v5441_v35  ;;  %3031 = vmatprep.subr.bf16.mxu1 %v7448_v53  ;;  %v5481_v35 = vld [vmem:[%s7443_s0 + $0x740] ss:$20 sps:$4 sm:$0xff]  }
  0xfd   : > { %v6444_v40 = vpop.f32.mrf.mxu0  ;;  %v6446_v41 = vpop.f32.mrf.mxu1  ;;  %2292 = vmatmul.mubr.bf16.vlgmr.msra.gmra.mxu0 %v5584_v42  ;;  %2918 = vmatmul.mubr.bf16.vlgmr.msra.gmra.mxu1 %v6432_v36  ;;  %v5482_v42 = vld [vmem:[%s7443_s0 + $0x710] ss:$20 sps:$4 sm:$0xff]  }
  0xfe   : > { %2959 = vmatpush1.bf16.msra.mxu0 %v5439_v37  ;;  %3032 = vmatpush1.bf16.msra.mxu1 %v5442_v38 }
  0xff   : > { %v6456_v46 = vpop.f32.mrf.mxu0  ;;  %v6458_v63 = vpop.f32.mrf.mxu1  ;;  %2960 = vmatprep.subr.bf16.mxu0 %v5445_v39  ;;  %3033 = vmatprep.subr.bf16.mxu1 %v7448_v53  ;;  %v5484_v39 = vld [vmem:[%s7443_s0 + $0x714] ss:$20 sps:$4 sm:$0xff]  }
 0x100   : > { %4786 = vmatprep.mubr.msk.bf16.mxu0 %vm636_vm0, %v5585_v48  ;;  %4930 = vmatprep.mubr.msk.bf16.mxu1 %vm636_vm0, %v6023_v45  ;;  %v5453_v45 = vld [vmem:[%s7443_s0 + $0x64c] ss:$20 sps:$4 sm:$0xff]  }
 0x101   : > { %v6468_v50 = vpop.f32.mrf.mxu0  ;;  %v6470_v51 = vpop.f32.mrf.mxu1  ;;  %v5488_v48 = vld [vmem:[%s7443_s0 + $0x6ec] ss:$20 sps:$4 sm:$0xff]  }
 0x102   : > { %2961 = vmatpush1.bf16.msra.mxu0 %v5443_v43  ;;  %3034 = vmatpush1.bf16.msra.mxu1 %v5446_v44  ;;  %v5485_v43 = vld [vmem:[%s7443_s0 + $0x718] ss:$20 sps:$4 sm:$0xff]  }
 0x103   : > { %v6478_v56 = vpop.f32.mrf.mxu0  ;;  %v6480_v57 = vpop.f32.mrf.mxu1  ;;  %2962 = vmatprep.subr.bf16.mxu0 %v5449_v47  ;;  %3035 = vmatprep.subr.bf16.mxu1 %v7448_v53 }
 0x105   : > { %2300 = vmatmul.mubr.bf16.gmra.mxu0 %v5586_v58  ;;  %2928 = vmatmul.mubr.bf16.gmra.mxu1 %v6042_v49  ;;  %v6488_v59 = vpop.f32.mrf.mxu0  ;;  %v6490_v61 = vpop.f32.mrf.mxu1  ;;  %v5457_v49 = vld [vmem:[%s7443_s0 + $0x624] ss:$20 sps:$4 sm:$0xff]  }
 0x106   : > { %2963 = vmatpush1.bf16.msra.mxu0 %v5447_v52  ;;  %3036 = vmatpush1.bf16.msra.mxu1 %v5450_v54  ;;  %v5486_v52 = vld [vmem:[%s7443_s0 + $0x6e8] ss:$20 sps:$4 sm:$0xff]   ;;  %v5489_v54 = vld [vmem:[%s7443_s0 + $0x6f0] ss:$20 sps:$4 sm:$0xff]  }
 0x107   : > { %2964 = vmatprep.subr.bf16.mxu0 %v5453_v45  ;;  %3037 = vmatprep.subr.bf16.mxu1 %v7448_v53  ;;  %v6502_v0 = vpop.f32.mrf.mxu0  ;;  %v6504_v1 = vpop.f32.mrf.mxu1 }
 0x108   : > { %4787 = vmatprep.mubr.msk.bf16.mxu0 %vm636_vm0, %v6507_v2  ;;  %4931 = vmatprep.mubr.msk.bf16.mxu1 %vm636_vm0, %v6341_v11 }
 0x109   : > { %v6513_v4 = vpop.f32.mrf.mxu0  ;;  %v6515_v3 = vpop.f32.mrf.mxu1 }
 0x10a   : > { %2965 = vmatpush1.bf16.msra.mxu0 %v5451_v55  ;;  %3038 = vmatpush1.bf16.msra.mxu1 %v5454_v62  ;;  %v5492_v55 = vld [vmem:[%s7443_s0 + $0x89c] ss:$20 sps:$4 sm:$0xff]   ;;  %v5495_v62 = vld [vmem:[%s7443_s0 + $0x8a4] ss:$20 sps:$4 sm:$0xff]  }
 0x10b   : > { %2966 = vmatprep.subr.bf16.mxu0 %v5457_v49  ;;  %3039 = vmatprep.subr.bf16.mxu1 %v7448_v53  ;;  %v6527_v8 = vpop.f32.mrf.mxu0  ;;  %v6529_v12 = vpop.f32.mrf.mxu1  ;;  %v5490_v49 = vld [vmem:[%s7443_s0 + $0x898] ss:$20 sps:$4 sm:$0xff]  }
 0x10d   : > { %2308 = vmatmul.mubr.bf16.gmra.mxu0 %v6535_v10  ;;  %2938 = vmatmul.mubr.bf16.gmra.mxu1 %v6360_v16  ;;  %v6549_v17 = vpop.f32.mrf.mxu0  ;;  %v6551_v60 = vpop.f32.mrf.mxu1 }
 0x10e   : > { %2967 = vmatpush1.bf16.msra.mxu0 %v5455_v5  ;;  %3040 = vmatpush1.bf16.msra.mxu1 %v5458_v7  ;;  %v5493_v5 = vld [vmem:[%s7443_s0 + $0x8a0] ss:$20 sps:$4 sm:$0xff]  }
 0x10f   : > { %2968 = vmatprep.subr.bf16.mxu0 %v5461_v6  ;;  %3041 = vmatprep.subr.bf16.mxu1 %v7448_v53  ;;  %v6570_v23 = vpop.f32.mrf.mxu0  ;;  %v6572_v24 = vpop.f32.mrf.mxu1 }
 0x110   : > { %4788 = vmatprep.mubr.msk.bf16.mxu0 %vm636_vm0, %v6341_v11  ;;  %4932 = vmatprep.mubr.msk.bf16.mxu1 %vm636_vm0, %v6532_v9 }
 0x111   : > { %v6583_v27 = vpop.f32.mrf.mxu0  ;;  %v6585_v28 = vpop.f32.mrf.mxu1 }
 0x112   : > { %2969 = vmatpush1.bf16.msra.mxu0 %v5459_v13  ;;  %3042 = vmatpush1.bf16.msra.mxu1 %v5462_v14  ;;  %v5498_v13 = vld [vmem:[%s7443_s0 + $0x874] ss:$20 sps:$4 sm:$0xff]   ;;  %v5501_v14 = vld [vmem:[%s7443_s0 + $0x87c] ss:$20 sps:$4 sm:$0xff]  }
 0x113   : > { %2970 = vmatprep.subr.bf16.mxu0 %v5468_v15  ;;  %3043 = vmatprep.subr.bf16.mxu1 %v7448_v53  ;;  %v6601_v32 = vpop.f32.mrf.mxu0  ;;  %v6603_v33 = vpop.f32.mrf.mxu1 }
 0x115   : > { %2316 = vmatmul.mubr.bf16.gmra.mxu0 %v6360_v16  ;;  %2948 = vmatmul.mubr.bf16.gmra.mxu1 %v6558_v18  ;;  %v6614_v37 = vpop.f32.mrf.mxu0  ;;  %v6616_v38 = vpop.f32.mrf.mxu1 }
 0x116   : > { %2971 = vmatpush1.bf16.msra.mxu0 %v5466_v20  ;;  %3044 = vmatpush1.bf16.msra.mxu1 %v5469_v21 }
 0x117   : > { %2972 = vmatprep.subr.bf16.mxu0 %v5472_v22  ;;  %3045 = vmatprep.subr.bf16.mxu1 %v7448_v53  ;;  %v6628_v44 = vpop.f32.mrf.mxu0  ;;  %v6630_v47 = vpop.f32.mrf.mxu1  ;;  %v5496_v22 = vld [vmem:[%s7443_s0 + $0x870] ss:$20 sps:$4 sm:$0xff]  }
 0x118   : > { %4933 = vmatprep.mubr.msk.bf16.mxu0 %vm636_vm0, %v6373_v19  ;;  %4937 = vmatprep.mubr.msk.bf16.mxu1 %vm636_vm0, %v6373_v19  ;;  %v5480_v19 = vld [vmem:[%s7443_s0 + $0x73c] ss:$20 sps:$4 sm:$0xff]  }
 0x119   : > { %v6642_v45 = vpop.f32.mrf.mxu0  ;;  %v6644_v58 = vpop.f32.mrf.mxu1 }
 0x11a   : > { %2973 = vmatpush1.bf16.msra.mxu0 %v5470_v25  ;;  %3046 = vmatpush1.bf16.msra.mxu1 %v5473_v26  ;;  %v5499_v25 = vld [vmem:[%s7443_s0 + $0x878] ss:$20 sps:$4 sm:$0xff]  }
 0x11b   : > { %2982 = vmatprep.subr.bf16.mxu0 %v5476_v29  ;;  %3055 = vmatprep.subr.bf16.mxu1 %v7448_v53  ;;  %v6659_v7 = vpop.f32.mrf.mxu0  ;;  %v6661_v6 = vpop.f32.mrf.mxu1 }
 0x11e   : > { %2983 = vmatpush2.bf16.msra.mxu0 %v5474_v30  ;;  %3056 = vmatpush2.bf16.msra.mxu1 %v5477_v31 }
 0x11f   : > { %2984 = vmatprep.subr.bf16.mxu0 %v5480_v19  ;;  %3057 = vmatprep.subr.bf16.mxu1 %v7448_v53 }
 0x122   : > { %2985 = vmatpush2.bf16.msra.mxu0 %v5478_v34  ;;  %3058 = vmatpush2.bf16.msra.mxu1 %v5481_v35  ;;  %v5502_v35 = vld [vmem:[%s7443_s0 + $0x848] ss:$20 sps:$4 sm:$0xff]  }
 0x123   : > { %2986 = vmatprep.subr.bf16.mxu0 %v5484_v39  ;;  %3059 = vmatprep.subr.bf16.mxu1 %v7448_v53 }
 0x126   : > { %2987 = vmatpush2.bf16.msra.mxu0 %v5482_v42  ;;  %3060 = vmatpush2.bf16.msra.mxu1 %v5485_v43 }
 0x127   : > { %2988 = vmatprep.subr.bf16.mxu0 %v5488_v48  ;;  %3061 = vmatprep.subr.bf16.mxu1 %v7448_v53 }
 0x12a   : > { %2989 = vmatpush2.bf16.msra.mxu0 %v5486_v52  ;;  %3062 = vmatpush2.bf16.msra.mxu1 %v5489_v54  ;;  %v5508_v54 = vld [vmem:[%s7443_s0 + $0x820] ss:$20 sps:$4 sm:$0xff]  }
 0x12b   : > { %3657 = vmatprep.subr.bf16.mxu0 %v5492_v55  ;;  %3730 = vmatprep.subr.bf16.mxu1 %v5495_v62  ;;  %v5511_v55 = vld [vmem:[%s7443_s0 + $0x828] ss:$20 sps:$4 sm:$0xff]  }
 0x12d   : > { %v6669_v15 = vpop.f32.mrf.mxu0  ;;  %v1375_v20 = vpop.f32.mrf.mxu1  ;;  %2991 = vmatmul.mubr.bf16.vlgmr.msra.gmra.mxu0 %v6432_v36  ;;  %3064 = vmatmul.mubr.bf16.vlgmr.msra.gmra.mxu1 %v6432_v36  ;;  %v5504_v36 = vld [vmem:[%s7443_s0 + $0x84c] ss:$20 sps:$4 sm:$0xff]  }
 0x12e   : > { %v6674_v21 = vadd.f32 %v1375_v20, %v6444_v40  ;;  %3658 = vmatpush1.bf16.msra.mxu0 %v5490_v49  ;;  %3731 = vmatpush1.bf16.msra.mxu1 %v5493_v5  ;;  %v5507_v40 = vld [vmem:[%s7443_s0 + $0x854] ss:$20 sps:$4 sm:$0xff]  }
 0x12f   : > { %v831_v26 = vpop.f32.mrf.mxu0  ;;  %v1377_v29 = vpop.f32.mrf.mxu1  ;;  %3659 = vmatprep.subr.bf16.mxu0 %v5498_v13  ;;  %3732 = vmatprep.subr.bf16.mxu1 %v5501_v14 }
 0x130   : > { %v6689_v30 = vadd.f32 %v1377_v29, %v6456_v46  ;;  %4934 = vmatprep.mubr.msk.bf16.mxu0 %vm636_vm0, %v6507_v2  ;;  %4938 = vmatprep.mubr.msk.bf16.mxu1 %vm636_vm0, %v6507_v2  ;;  %v5505_v46 = vld [vmem:[%s7443_s0 + $0x850] ss:$20 sps:$4 sm:$0xff]   ;;  %v5513_v2 = vld [vmem:[%s7443_s0 + $0x82c] ss:$20 sps:$4 sm:$0xff]  }
 0x131   : > { %v6695_v31 = vpop.f32.mrf.mxu0  ;;  %v1379_v19 = vpop.f32.mrf.mxu1 }
 0x132   : > { %v6698_v34 = vadd.f32 %v1379_v19, %v6468_v50  ;;  %3660 = vmatpush1.bf16.msra.mxu0 %v5496_v22  ;;  %3733 = vmatpush1.bf16.msra.mxu1 %v5499_v25  ;;  %v5510_v50 = vld [vmem:[%s7443_s0 + $0x824] ss:$20 sps:$4 sm:$0xff]  }
 0x133   : > { %v834_v39 = vpop.f32.mrf.mxu0  ;;  %v6706_v42 = vpop.f32.mrf.mxu1  ;;  %3661 = vmatprep.subr.bf16.mxu0 %v5504_v36  ;;  %3734 = vmatprep.subr.bf16.mxu1 %v5507_v40  ;;  %v5514_v22 = vld [vmem:[%s7443_s0 + $0x7f8] ss:$20 sps:$4 sm:$0xff]   ;;  %v5520_v19 = vld [vmem:[%s7443_s0 + $0x7d0] ss:$20 sps:$4 sm:$0xff]  }
 0x135   : > { %v1385_v43 = vpop.f32.mrf.mxu1  ;;  %3001 = vmatmul.mubr.bf16.gmra.mxu0 %v6535_v10  ;;  %3072 = vmatmul.mubr.bf16.gmra.mxu1 %v6535_v10  ;;  %v6716_v48 = vpop.f32.mrf.mxu0  ;;  %v5516_v10 = vld [vmem:[%s7443_s0 + $0x7fc] ss:$20 sps:$4 sm:$0xff]  }
 0x136   : > { %v6719_v52 = vadd.f32 %v1385_v43, %v6488_v59  ;;  %3662 = vmatpush1.bf16.msra.mxu0 %v5502_v35  ;;  %3735 = vmatpush1.bf16.msra.mxu1 %v5505_v46  ;;  %v5519_v59 = vld [vmem:[%s7443_s0 + $0x804] ss:$20 sps:$4 sm:$0xff]  }
 0x137   : > { %v1387_v62 = vpop.f32.mrf.mxu1  ;;  %3663 = vmatprep.subr.bf16.mxu0 %v5510_v50  ;;  %3736 = vmatprep.subr.bf16.mxu1 %v5513_v2  ;;  %v839_v49 = vpop.f32.mrf.mxu0  ;;  %v5523_v35 = vld [vmem:[%s7443_s0 + $0x7d8] ss:$20 sps:$4 sm:$0xff]  }
 0x138   : > { %v6734_v5 = vadd.f32 %v1387_v62, %v6502_v0  ;;  %4935 = vmatprep.mubr.msk.bf16.mxu0 %vm636_vm0, %v6341_v11  ;;  %4939 = vmatprep.mubr.msk.bf16.mxu1 %vm636_vm0, %v6341_v11  ;;  %v5517_v0 = vld [vmem:[%s7443_s0 + $0x800] ss:$20 sps:$4 sm:$0xff]  }
 0x139   : > { %v1389_v13 = vpop.f32.mrf.mxu1  ;;  %v6740_v14 = vpop.f32.mrf.mxu0  ;;  %v5522_v11 = vld [vmem:[%s7443_s0 + $0x7d4] ss:$20 sps:$4 sm:$0xff]  }
 0x13a   : > { %v6743_v20 = vadd.f32 %v1389_v13, %v6513_v4  ;;  %3664 = vmatpush1.bf16.msra.mxu0 %v5508_v54  ;;  %3737 = vmatpush1.bf16.msra.mxu1 %v5511_v55  ;;  %v5525_v4 = vld [vmem:[%s7443_s0 + $0x7dc] ss:$20 sps:$4 sm:$0xff]   ;;  %v6806_v13 = vld [vmem:[%s5741_s14 + $0x44] ss:$8 sps:$4 sm:$0xff]  }
 0x13b   : > { %v6751_v25 = vpop.f32.mrf.mxu1  ;;  %3665 = vmatprep.subr.bf16.mxu0 %v5516_v10  ;;  %3738 = vmatprep.subr.bf16.mxu1 %v5519_v59  ;;  %v842_v26 = vpop.f32.mrf.mxu0  ;;  %v5529_v55 = vld [vmem:[%s7443_s0 + $0x7b0] ss:$20 sps:$4 sm:$0xff]  }
 0x13c   : > { %v5534_v10 = vld [vmem:[%s7443_s0 + $0x784] ss:$20 sps:$4 sm:$0xff]  }
 0x13d   : > { %v1395_v29 = vpop.f32.mrf.mxu1  ;;  %3011 = vmatmul.mubr.bf16.gmra.mxu0 %v6360_v16  ;;  %3080 = vmatmul.mubr.bf16.gmra.mxu1 %v6360_v16  ;;  %v6761_v36 = vpop.f32.mrf.mxu0  ;;  %v5528_v16 = vld [vmem:[%s7443_s0 + $0x7ac] ss:$20 sps:$4 sm:$0xff]  }
 0x13e   : > { %v6764_v40 = vadd.f32 %v1395_v29, %v6549_v17  ;;  %3666 = vmatpush1.bf16.msra.mxu0 %v5514_v22  ;;  %3739 = vmatpush1.bf16.msra.mxu1 %v5517_v0  ;;  %v5531_v17 = vld [vmem:[%s7443_s0 + $0x7b4] ss:$20 sps:$4 sm:$0xff]   ;;  %v5540_v29 = vld [vmem:[%s7443_s0 + $0x93c] ss:$20 sps:$4 sm:$0xff]  }
 0x13f   : > { %v1397_v46 = vpop.f32.mrf.mxu1  ;;  %3667 = vmatprep.subr.bf16.mxu0 %v5522_v11  ;;  %3740 = vmatprep.subr.bf16.mxu1 %v5525_v4  ;;  %v847_v39 = vpop.f32.mrf.mxu0  ;;  %v5532_v4 = vld [vmem:[%s7443_s0 + $0x780] ss:$20 sps:$4 sm:$0xff]  }
 0x140   : > { %v6779_v50 = vadd.f32 %v1397_v46, %v6570_v23  ;;  %4936 = vmatprep.mubr.msk.bf16.mxu0 %vm636_vm0, %v6532_v9  ;;  %4940 = vmatprep.mubr.msk.bf16.mxu1 %vm636_vm0, %v6532_v9  ;;  %v5526_v23 = vld [vmem:[%s7443_s0 + $0x7a8] ss:$20 sps:$4 sm:$0xff]   ;;  %v5538_v39 = vld [vmem:[%s7443_s0 + $0x938] ss:$20 sps:$4 sm:$0xff]  }
 0x141   : > { %v1399_v2 = vpop.f32.mrf.mxu1  ;;  %v6785_v43 = vpop.f32.mrf.mxu0 }
 0x142   : > { %v6788_v54 = vadd.f32 %v1399_v2, %v6583_v27  ;;  %3668 = vmatpush1.bf16.msra.mxu0 %v5520_v19  ;;  %3741 = vmatpush1.bf16.msra.mxu1 %v5523_v35  ;;  %v5537_v27 = vld [vmem:[%s7443_s0 + $0x78c] ss:$20 sps:$4 sm:$0xff]  }
 0x143   : > { %v1401_v62 = vpop.f32.mrf.mxu1  ;;  %3669 = vmatprep.subr.bf16.mxu0 %v5528_v16  ;;  %3742 = vmatprep.subr.bf16.mxu1 %v5531_v17  ;;  %v850_v59 = vpop.f32.mrf.mxu0 }
 0x144   : > { %v6803_v49 = vadd.f32 %v1401_v62, %v6601_v32  ;;  %v5535_v32 = vld [vmem:[%s7443_s0 + $0x788] ss:$20 sps:$4 sm:$0xff]   ;;  %v5552_v59 = vld [vmem:[%s7443_s0 + $0x8ec] ss:$20 sps:$4 sm:$0xff]  }
 0x145   : > { %v1405_v22 = vpop.f32.mrf.mxu1  ;;  %3021 = vmatmul.mubr.bf16.gmra.mxu0 %v6558_v18  ;;  %3088 = vmatmul.mubr.bf16.gmra.mxu1 %v6558_v18  ;;  %v6810_v0 = vpop.f32.mrf.mxu0 }
 0x146   : > { %v6813_v11 = vadd.f32 %v1405_v22, %v6614_v37  ;;  %3670 = vmatpush1.bf16.msra.mxu0 %v5526_v23  ;;  %3743 = vmatpush1.bf16.msra.mxu1 %v5529_v55  ;;  %v5543_v37 = vld [vmem:[%s7443_s0 + $0x944] ss:$20 sps:$4 sm:$0xff]   ;;  %v5546_v23 = vld [vmem:[%s7443_s0 + $0x914] ss:$20 sps:$4 sm:$0xff]  }
 0x147   : > { %v1407_v26 = vpop.f32.mrf.mxu1  ;;  %3671 = vmatprep.subr.bf16.mxu0 %v5534_v10  ;;  %3744 = vmatprep.subr.bf16.mxu1 %v5537_v27  ;;  %v855_v19 = vpop.f32.mrf.mxu0  ;;  %v5544_v10 = vld [vmem:[%s7443_s0 + $0x910] ss:$20 sps:$4 sm:$0xff]   ;;  %v5547_v27 = vld [vmem:[%s7443_s0 + $0x918] ss:$20 sps:$4 sm:$0xff]   ;;  %v5550_v22 = vld [vmem:[%s7443_s0 + $0x8e8] ss:$20 sps:$4 sm:$0xff]  }
 0x148   : > { %v6828_v35 = vadd.f32 %v1407_v26, %v6628_v44  ;;  %5081 = vmatprep.mubr.msk.bf16.mxu0 %vm636_vm0, %v6806_v13  ;;  %5085 = vmatprep.mubr.msk.bf16.mxu1 %vm636_vm0, %v6806_v13  ;;  %v5541_v44 = vld [vmem:[%s7443_s0 + $0x940] ss:$20 sps:$4 sm:$0xff]  }
 0x149   : > { %v1409_v46 = vpop.f32.mrf.mxu1  ;;  %v6834_v16 = vpop.f32.mrf.mxu0  ;;  %v5561_v26 = vld [vmem:[%s7443_s0 + $0x8cc] ss:$20 sps:$4 sm:$0xff]  }
 0x14a   : > { %v6837_v17 = vadd.f32 %v1409_v46, %v6642_v45  ;;  %3672 = vmatpush1.bf16.msra.mxu0 %v5532_v4  ;;  %3745 = vmatpush1.bf16.msra.mxu1 %v5535_v32  ;;  %v5549_v45 = vld [vmem:[%s7443_s0 + $0x91c] ss:$20 sps:$4 sm:$0xff]   ;;  %v5558_v32 = vld [vmem:[%s7443_s0 + $0x8c4] ss:$20 sps:$4 sm:$0xff]   ;;  %v6885_v19 = vld [vmem:[%s5741_s14 + $0x40] ss:$8 sps:$4 sm:$0xff]  }
 0x14b   : > { %v1411_v2 = vpop.f32.mrf.mxu1  ;;  %3681 = vmatprep.subr.bf16.mxu0 %v5540_v29  ;;  %3754 = vmatprep.subr.bf16.mxu1 %v5543_v37  ;;  %v858_v55 = vpop.f32.mrf.mxu0  ;;  %v5553_v4 = vld [vmem:[%s7443_s0 + $0x8f0] ss:$20 sps:$4 sm:$0xff]   ;;  %v5556_v29 = vld [vmem:[%s7443_s0 + $0x8c0] ss:$20 sps:$4 sm:$0xff]   ;;  %v5559_v37 = vld [vmem:[%s7443_s0 + $0x8c8] ss:$20 sps:$4 sm:$0xff]  }
 0x14c   : > { %v6852_v62 = vadd.f32 %v1411_v2, %v6659_v7  ;;  %v5555_v7 = vld [vmem:[%s7443_s0 + $0x8f4] ss:$20 sps:$4 sm:$0xff]  }
 0x14d   : > { %v5565_v46 = vld [vmem:[%s7443_s0 + $0x8a8] ss:$20 sps:$4 sm:$0xff]  }
 0x14e   : > { %3682 = vmatpush2.bf16.msra.mxu0 %v5538_v39  ;;  %3755 = vmatpush2.bf16.msra.mxu1 %v5541_v44  ;;  %v6893_v39 = vld [vmem:[%s5741_s14 + $0x54] ss:$8 sps:$4 sm:$0xff]  }
 0x14f   : > { %3683 = vmatprep.subr.bf16.mxu0 %v5546_v23  ;;  %3756 = vmatprep.subr.bf16.mxu1 %v5549_v45  ;;  %v5566_v45 = vld [vmem:[%s7443_s0 + $0x880] ss:$20 sps:$4 sm:$0xff]  }
 0x152   : > { %3684 = vmatpush2.bf16.msra.mxu0 %v5544_v10  ;;  %3757 = vmatpush2.bf16.msra.mxu1 %v5547_v27 }
 0x153   : > { %3685 = vmatprep.subr.bf16.mxu0 %v5552_v59  ;;  %3758 = vmatprep.subr.bf16.mxu1 %v5555_v7  ;;  %v6916_v59 = vld [vmem:[%s5741_s14 + $0x50] ss:$8 sps:$4 sm:$0xff]  }
 0x156   : > { %3686 = vmatpush2.bf16.msra.mxu0 %v5550_v22  ;;  %3759 = vmatpush2.bf16.msra.mxu1 %v5553_v4  ;;  %v5570_v22 = vld [vmem:[%s7443_s0 + $0x858] ss:$20 sps:$4 sm:$0xff]  }
 0x157   : > { %3687 = vmatprep.subr.bf16.mxu0 %v5558_v32  ;;  %3760 = vmatprep.subr.bf16.mxu1 %v5561_v26 }
 0x15a   : > { %3688 = vmatpush2.bf16.msra.mxu0 %v5556_v29  ;;  %3761 = vmatpush2.bf16.msra.mxu1 %v5559_v37  ;;  %v5571_v37 = vld [vmem:[%s7443_s0 + $0x830] ss:$20 sps:$4 sm:$0xff]  }
 0x15b   : > { %3803 = vmatprep.subr.bf16.mxu0 %v7448_v53  ;;  %5096 = vmatprep.subr.bf16.mxu1 %v7448_v53 }
 0x15d   : > { %v6895_v44 = vpop.f32.mrf.mxu0  ;;  %v1521_v2 = vpop.f32.mrf.mxu1  ;;  %3690 = vmatmul.mubr.bf16.vlgmr.msra.gmra.mxu0 %v6885_v19  ;;  %3763 = vmatmul.mubr.bf16.vlgmr.msra.gmra.mxu1 %v6885_v19 }
 0x15e   : > { %v6900_v23 = vadd.f32 %v1521_v2, %v6669_v15  ;;  %3804 = vmatpush1.bf16.msra.mxu0 %v5565_v46  ;;  %5108 = vmatpush1.bf16.msra.mxu1 %v5565_v46 }
 0x15f   : > { %v6905_v55 = vpop.f32.mrf.mxu0  ;;  %v1523_v10 = vpop.f32.mrf.mxu1  ;;  %3805 = vmatprep.subr.bf16.mxu0 %v7448_v53  ;;  %5097 = vmatprep.subr.bf16.mxu1 %v7448_v53 }
 0x160   : > { %5082 = vmatprep.mubr.msk.bf16.mxu0 %vm636_vm0, %v6893_v39  ;;  %5086 = vmatprep.mubr.msk.bf16.mxu1 %vm636_vm0, %v6893_v39 }
 0x161   : > { %v6913_v15 = vpop.f32.mrf.mxu0  ;;  %v1524_v27 = vpop.f32.mrf.mxu1 }
 0x162   : > { %v6919_v7 = vadd.f32 %v1524_v27, %v6695_v31  ;;  %3806 = vmatpush1.bf16.msra.mxu0 %v5566_v45  ;;  %5109 = vmatpush1.bf16.msra.mxu1 %v5566_v45  ;;  %v5572_v27 = vld [vmem:[%s7443_s0 + $0x808] ss:$20 sps:$4 sm:$0xff]  }
 0x163   : > { %v6924_v4 = vpop.f32.mrf.mxu0  ;;  %v1526_v32 = vpop.f32.mrf.mxu1  ;;  %3807 = vmatprep.subr.bf16.mxu0 %v7448_v53  ;;  %5098 = vmatprep.subr.bf16.mxu1 %v7448_v53 }
 0x164   : > { %7451 = vst [vmem:[#allocation4_spill] sm:$0xff] %v6919_v7 }
 0x165   : > { %v6928_v26 = vpop.f32.mrf.mxu0  ;;  %v1529_v29 = vpop.f32.mrf.mxu1  ;;  %3700 = vmatmul.mubr.bf16.gmra.mxu0 %v6916_v59  ;;  %3773 = vmatmul.mubr.bf16.gmra.mxu1 %v6916_v59 }
 0x166   : > { %v6933_v31 = vadd.f32 %v1529_v29, %v6716_v48  ;;  %3808 = vmatpush1.bf16.msra.mxu0 %v5570_v22  ;;  %5110 = vmatpush1.bf16.msra.mxu1 %v5570_v22  ;;  %v6959_v29 = vld [vmem:[%s5741_s14 + $0x74] ss:$8 sps:$4 sm:$0xff]  }
 0x167   : > { %v6938_v46 = vpop.f32.mrf.mxu0  ;;  %v1531_v2 = vpop.f32.mrf.mxu1  ;;  %3809 = vmatprep.subr.bf16.mxu0 %v7448_v53  ;;  %5099 = vmatprep.subr.bf16.mxu1 %v7448_v53 }
 0x168   : > { %7452 = vst [vmem:[#allocation5_spill] sm:$0xff] %v6933_v31  ;;  %5083 = vmatprep.mubr.msk.bf16.mxu0 %vm636_vm0, %v6532_v9  ;;  %5087 = vmatprep.mubr.msk.bf16.mxu1 %vm636_vm0, %v6532_v9 }
 0x169   : > { %v6946_v48 = vpop.f32.mrf.mxu0  ;;  %v1532_v45 = vpop.f32.mrf.mxu1 }
 0x16a   : > { %v6949_v10 = vadd.f32 %v1532_v45, %v6740_v14  ;;  %3810 = vmatpush1.bf16.msra.mxu0 %v5571_v37  ;;  %5111 = vmatpush1.bf16.msra.mxu1 %v5571_v37  ;;  %v5573_v37 = vld [vmem:[%s7443_s0 + $0x7e0] ss:$20 sps:$4 sm:$0xff]  }
 0x16b   : > { %v6954_v22 = vpop.f32.mrf.mxu0  ;;  %v1534_v32 = vpop.f32.mrf.mxu1  ;;  %3811 = vmatprep.subr.bf16.mxu0 %v7448_v53  ;;  %5100 = vmatprep.subr.bf16.mxu1 %v7448_v53 }
 0x16c   : > { %7453 = vst [vmem:[#allocation6_spill] sm:$0xff] %v6949_v10  ;;  %v7456_v10 = vmov 0  }
 0x16d   : > { %v1537_v2 = vpop.f32.mrf.mxu1  ;;  %3710 = vmatmul.mubr.bf16.gmra.mxu0 %v6558_v18  ;;  %3783 = vmatmul.mubr.bf16.gmra.mxu1 %v6558_v18  ;;  %v6969_v45 = vpop.f32.mrf.mxu0 }
 0x16e   : > { %v6964_v14 = vadd.f32 %v1537_v2, %v6761_v36  ;;  %3812 = vmatpush1.bf16.msra.mxu0 %v5572_v27  ;;  %5112 = vmatpush1.bf16.msra.mxu1 %v5572_v27  ;;  %v6978_v2 = vld [vmem:[%s5741_s14 + $0x70] ss:$8 sps:$4 sm:$0xff]  }
 0x16f   : > { %v1539_v32 = vpop.f32.mrf.mxu1  ;;  %3813 = vmatprep.subr.bf16.mxu0 %v7448_v53  ;;  %5101 = vmatprep.subr.bf16.mxu1 %v7448_v53 }
 0x170   : > { %7454 = vst [vmem:[#allocation7_spill] sm:$0xff] %v6964_v14  ;;  %5084 = vmatprep.mubr.msk.bf16.mxu0 %vm636_vm0, %v6959_v29  ;;  %5088 = vmatprep.mubr.msk.bf16.mxu1 %vm636_vm0, %v6959_v29  ;;  %v5577_v32 = vld [vmem:[%s7443_s0 + $0x7b8] ss:$20 sps:$4 sm:$0xff]   ;;  %v6986_v14 = vpop.f32.mrf.mxu0 }
 0x171   : > { %v1540_v36 = vpop.f32.mrf.mxu1 }
 0x172   : > { %v6981_v27 = vadd.f32 %v1540_v36, %v6785_v43  ;;  %3814 = vmatpush1.bf16.msra.mxu0 %v5573_v37  ;;  %5113 = vmatpush1.bf16.msra.mxu1 %v5573_v37  ;;  %v5578_v37 = vld [vmem:[%s7443_s0 + $0x790] ss:$20 sps:$4 sm:$0xff]   ;;  %v6998_v36 = vpop.f32.mrf.mxu0 }
 0x173   : > { %v1542_v53 = vpop.f32.mrf.mxu1  ;;  %3815 = vmatprep.subr.bf16.mxu0 %v7456_v10  ;;  %5102 = vmatprep.subr.bf16.mxu1 %v7456_v10 }
 0x174   : > { %7455 = vst [vmem:[#allocation8_spill] sm:$0xff] %v6981_v27 }
 0x175   : > { %v1545_v31 = vpop.f32.mrf.mxu1  ;;  %3720 = vmatmul.mubr.bf16.gmra.mxu0 %v6978_v2  ;;  %3793 = vmatmul.mubr.bf16.gmra.mxu1 %v6978_v2 }
 0x176   : > { %v6993_v43 = vadd.f32 %v1545_v31, %v6810_v0  ;;  %3816 = vmatpush1.bf16.msra.mxu0 %v5577_v32  ;;  %5114 = vmatpush1.bf16.msra.mxu1 %v5577_v32  ;;  %v5579_v32 = vld [vmem:[%s7443_s0 + $0x948] ss:$20 sps:$4 sm:$0xff]  }
 0x177   : > { %v1547_v53 = vpop.f32.mrf.mxu1  ;;  %3817 = vmatprep.subr.bf16.mxu0 %v7456_v10  ;;  %5103 = vmatprep.subr.bf16.mxu1 %v7456_v10 }
 0x178   : > { %7457 = vst [vmem:[#allocation9_spill] sm:$0xff] %v6993_v43  ;;  %5089 = vmatprep.mubr.msk.bf16.mxu0 %vm636_vm0, %v6806_v13  ;;  %5091 = vmatprep.mubr.msk.bf16.mxu1 %vm636_vm0, %v6532_v9  ;;  %v7012_v53 = vpop.f32.mrf.mxu0  ;;  %v5580_v9 = vld [vmem:[%s7443_s0 + $0x920] ss:$20 sps:$4 sm:$0xff]  }
 0x179   : > { %v1548_v0 = vpop.f32.mrf.mxu1 }
 0x17a   : > { %v7007_v31 = vadd.f32 %v1548_v0, %v6834_v16  ;;  %3818 = vmatpush1.bf16.msra.mxu0 %v5578_v37  ;;  %5115 = vmatpush1.bf16.msra.mxu1 %v5578_v37  ;;  %v7019_v16 = vpop.f32.mrf.mxu0  ;;  %v5581_v37 = vld [vmem:[%s7443_s0 + $0x8f8] ss:$20 sps:$4 sm:$0xff]  }
 0x17b   : > { %3827 = vmatprep.subr.bf16.mxu0 %v7456_v10  ;;  %5104 = vmatprep.subr.bf16.mxu1 %v7456_v10  ;;  %v1550_v13 = vpop.f32.mrf.mxu1 }
 0x17c   : > { %7458 = vst [vmem:[#allocation10_spill] sm:$0xff] %v7007_v31  ;;  %v7026_v0 = vpop.f32.mrf.mxu0  ;;  %v1594_v31 = vadd.f32 %v6895_v44, %v6446_v41 }
 0x17e   : > { %3828 = vmatpush2.bf16.msra.mxu0 %v5579_v32  ;;  %5116 = vmatpush2.bf16.msra.mxu1 %v5579_v32  ;;  %v5582_v32 = vld [vmem:[%s7443_s0 + $0x8d0] ss:$20 sps:$4 sm:$0xff]   ;;  %v7033_v13 = vpop.f32.mrf.mxu0 }
 0x17f   : > { %3829 = vmatprep.subr.bf16.mxu0 %v7456_v10  ;;  %5105 = vmatprep.subr.bf16.mxu1 %v7456_v10 }
 0x182   : > { %3830 = vmatpush2.bf16.msra.mxu0 %v5580_v9  ;;  %5117 = vmatpush2.bf16.msra.mxu1 %v5580_v9  ;;  %v7037_v9 = vpop.f32.mrf.mxu0 }
 0x183   : > { %3831 = vmatprep.subr.bf16.mxu0 %v7456_v10  ;;  %5106 = vmatprep.subr.bf16.mxu1 %v7456_v10 }
 0x186   : > { %3832 = vmatpush2.bf16.msra.mxu0 %v5581_v37  ;;  %5118 = vmatpush2.bf16.msra.mxu1 %v5581_v37  ;;  %v1595_v37 = vadd.f32 %v6905_v55, %v6458_v63 }
 0x187   : > { %3833 = vmatprep.subr.bf16.mxu0 %v7456_v10  ;;  %5107 = vmatprep.subr.bf16.mxu1 %v7456_v10 }
 0x18a   : > { %3834 = vmatpush2.bf16.msra.mxu0 %v5582_v32  ;;  %5119 = vmatpush2.bf16.msra.mxu1 %v5582_v32 }
 0x18d   : > { %v2147_v43 = vpop.f32.mrf.mxu0  ;;  %v2220_v27 = vpop.f32.mrf.mxu1  ;;  %3836 = vmatmul.mubr.bf16.vlgmr.msra.gmra.mxu0 %v6885_v19  ;;  %3852 = vmatmul.mubr.bf16.vlgmr.msra.gmra.mxu1 %v6558_v18  ;;  %v1599_v19 = vadd.f32 %v6913_v15, %v6470_v51 }
 0x18e   : > { %v7046_v7 = vadd.f32 %v2147_v43, %v6674_v21  ;;  %v7048_v10 = vadd.f32 %v2220_v27, %v1594_v31  ;;  %5090 = vmatprep.mubr.msk.bf16.mxu0 %vm636_vm0, %v6893_v39  ;;  %5092 = vmatprep.mubr.msk.bf16.mxu1 %vm636_vm0, %v6959_v29  ;;  %v1598_v27 = vadd.f32 %v6706_v42, %v6478_v56 }
 0x18f   : > { %v2149_v41 = vpop.f32.mrf.mxu0  ;;  %v2222_v44 = vpop.f32.mrf.mxu1  ;;  %v1600_v39 = vadd.f32 %v6924_v4, %v6480_v57  ;;  %v1605_v56 = vadd.f32 %v6938_v46, %v6504_v1  ;;  %v1609_v4 = vadd.f32 %v6946_v48, %v6515_v3  ;;  %v1608_v1 = vadd.f32 %v6751_v25, %v6527_v8 }
 0x190   : > { %v7057_v18 = vadd.f32 %v2149_v41, %v6689_v30  ;;  %v7059_v63 = vadd.f32 %v2222_v44, %v1595_v37  ;;  %v1604_v30 = vadd.f32 %v6928_v26, %v6490_v61  ;;  %v1615_v8 = vadd.f32 %v6986_v14, %v6572_v24 }
 0x191   : > { %v2151_v21 = vpop.f32.mrf.mxu0  ;;  %v2224_v55 = vpop.f32.mrf.mxu1  ;;  %v1620_v24 = vadd.f32 %v7012_v53, %v6603_v33 }
 0x192   : > { %v7066_v29 = vadd.f32 %v2151_v21, %v6698_v34  ;;  %v7068_v43 = vadd.f32 %v2224_v55, %v1599_v19 }
 0x193   : > { %v2153_v31 = vpop.f32.mrf.mxu0  ;;  %v2226_v51 = vpop.f32.mrf.mxu1 }
 0x194   : > { %v7072_v15 = vadd.f32 %v2153_v31, %v1598_v27  ;;  %v7074_v32 = vadd.f32 %v2226_v51, %v1600_v39  ;;  %v1619_v31 = vadd.f32 %v6998_v36, %v6585_v28  ;;  %v1624_v28 = vadd.f32 %v7019_v16, %v6616_v38 }
 0x195   : > { %v2157_v37 = vpop.f32.mrf.mxu0  ;;  %v2230_v41 = vpop.f32.mrf.mxu1  ;;  %3844 = vmatmul.mubr.bf16.gmra.mxu0 %v6916_v59  ;;  %3860 = vmatmul.mubr.bf16.gmra.mxu1 %v6978_v2 }
 0x196   : > { %v7081_v57 = vadd.f32 %v2157_v37, %v6719_v52  ;;  %v7083_v34 = vadd.f32 %v2230_v41, %v1604_v30  ;;  %v1610_v52 = vadd.f32 %v6954_v22, %v6529_v12 }
 0x197   : > { %v2159_v42 = vpop.f32.mrf.mxu0  ;;  %v2232_v61 = vpop.f32.mrf.mxu1 }
 0x198   : > { %v7088_v26 = vadd.f32 %v2159_v42, %v6734_v5  ;;  %v7090_v44 = vadd.f32 %v2232_v61, %v1605_v56  ;;  %v1614_v5 = vadd.f32 %v6969_v45, %v6551_v60  ;;  %v1625_v61 = vadd.f32 %v7026_v0, %v6630_v47 }
 0x199   : > { %v2161_v59 = vpop.f32.mrf.mxu0  ;;  %v2234_v2 = vpop.f32.mrf.mxu1 }
 0x19a   : > { %v7097_v46 = vadd.f32 %v2161_v59, %v6743_v20  ;;  %v7099_v19 = vadd.f32 %v2234_v2, %v1609_v4  ;;  %v1629_v59 = vadd.f32 %v7033_v13, %v6644_v58 }
 0x19b   : > { %v2163_v21 = vpop.f32.mrf.mxu0  ;;  %v2236_v3 = vpop.f32.mrf.mxu1 }
 0x19c   : > { %v7103_v48 = vadd.f32 %v2163_v21, %v1608_v1  ;;  %v7105_v55 = vadd.f32 %v2236_v3, %v1610_v52  ;;  %v1630_v1 = vadd.f32 %v7037_v9, %v6661_v6 }
 0x19d   : > { %v2167_v27 = vpop.f32.mrf.mxu0  ;;  %v2240_v39 = vpop.f32.mrf.mxu1 }
 0x19e   : > { %v7110_v12 = vadd.f32 %v2167_v27, %v6764_v40  ;;  %v7112_v20 = vadd.f32 %v2240_v39, %v1614_v5 }
 0x19f   : > { %v2169_v25 = vpop.f32.mrf.mxu0  ;;  %v2242_v22 = vpop.f32.mrf.mxu1 }
 0x1a0   : > { %v7117_v60 = vadd.f32 %v2169_v25, %v6779_v50  ;;  %v7119_v45 = vadd.f32 %v2242_v22, %v1615_v8  ;;  %v7459_v8 = vld [vmem:[#allocation4_spill] sm:$0xff] }
 0x1a1   : > { %v2171_v51 = vpop.f32.mrf.mxu0  ;;  %v2244_v30 = vpop.f32.mrf.mxu1 }
 0x1a2   : > { %v7124_v40 = vadd.f32 %v2171_v51, %v6788_v54  ;;  %v7126_v14 = vadd.f32 %v2244_v30, %v1619_v31  ;;  %v7460_v30 = vld [vmem:[#allocation5_spill] sm:$0xff] }
 0x1a3   : > { %v2173_v37 = vpop.f32.mrf.mxu0  ;;  %v2246_v41 = vpop.f32.mrf.mxu1 }
 0x1a4   : > { %v2390_v50 = vadd.f32 %v2173_v37, %v6803_v49  ;;  %v7131_v36 = vadd.f32 %v2246_v41, %v1620_v24 }
 0x1a5   : > { %v2177_v56 = vpop.f32.mrf.mxu0  ;;  %v2250_v42 = vpop.f32.mrf.mxu1 }
 0x1a6   : > { %v2394_v33 = vadd.f32 %v2177_v56, %v6813_v11  ;;  %v7136_v54 = vadd.f32 %v2250_v42, %v1624_v28  ;;  %v7461_v42 = vld [vmem:[#allocation6_spill] sm:$0xff] }
 0x1a7   : > { %v2179_v53 = vpop.f32.mrf.mxu0  ;;  %v2252_v4 = vpop.f32.mrf.mxu1 }
 0x1a8   : > { %v2395_v38 = vadd.f32 %v2179_v53, %v6828_v35  ;;  %v7141_v16 = vadd.f32 %v2252_v4, %v1625_v61 }
 0x1a9   : > { %v2181_v49 = vpop.f32.mrf.mxu0  ;;  %v2254_v2 = vpop.f32.mrf.mxu1 }
 0x1aa   : > { %v2399_v47 = vadd.f32 %v2181_v49, %v6837_v17  ;;  %v7146_v0 = vadd.f32 %v2254_v2, %v1629_v59  ;;  %v7462_v2 = vld [vmem:[#allocation7_spill] sm:$0xff] }
 0x1ab   : > { %v2183_v11 = vpop.f32.mrf.mxu0  ;;  %v2256_v52 = vpop.f32.mrf.mxu1 }
 0x1ac   : > { %v2400_v21 = vadd.f32 %v2183_v11, %v6852_v62  ;;  %v7149_v3 = vadd.f32 %v2256_v52, %v1630_v1 }
 0x1bd   : > { %v2293_v58 = vpop.f32.mrf.mxu0  ;;  %v2919_v13 = vpop.f32.mrf.mxu1 }
 0x1be   : > { %v2368_v35 = vadd.f32 %v2293_v58, %v6900_v23  ;;  %v7153_v5 = vadd.f32 %v2919_v13, %v7046_v7 }
 0x1bf   : > { %v2295_v27 = vpop.f32.mrf.mxu0  ;;  %v2921_v39 = vpop.f32.mrf.mxu1 }
 0x1c0   : > { %v7156_v6 = vadd.f32 %v2921_v39, %v7057_v18  ;;  %v7463_v27 = vld [vmem:[#allocation8_spill] sm:$0xff] }
 0x1c1   : > { %v2296_v17 = vpop.f32.mrf.mxu0  ;;  %v2923_v9 = vpop.f32.mrf.mxu1 }
 0x1c2   : > { %v2373_v25 = vadd.f32 %v2296_v17, %v7459_v8  ;;  %v7160_v62 = vadd.f32 %v2923_v9, %v7066_v29 }
 0x1c3   : > { %v2298_v22 = vpop.f32.mrf.mxu0  ;;  %v2925_v31 = vpop.f32.mrf.mxu1 }
 0x1c4   : > { %v7163_v51 = vadd.f32 %v2925_v31, %v7072_v15 }
 0x1c5   : > { %v2301_v23 = vpop.f32.mrf.mxu0  ;;  %v2929_v7 = vpop.f32.mrf.mxu1 }
 0x1c6   : > { %v2378_v24 = vadd.f32 %v2301_v23, %v7460_v30  ;;  %v7167_v37 = vadd.f32 %v2929_v7, %v7081_v57 }
 0x1c7   : > { %v2303_v18 = vpop.f32.mrf.mxu0  ;;  %v2931_v41 = vpop.f32.mrf.mxu1 }
 0x1c8   : > { %v7170_v28 = vadd.f32 %v2931_v41, %v7088_v26 }
 0x1c9   : > { %v2304_v56 = vpop.f32.mrf.mxu0  ;;  %v2933_v29 = vpop.f32.mrf.mxu1 }
 0x1ca   : > { %v2383_v61 = vadd.f32 %v2304_v56, %v7461_v42  ;;  %v7174_v53 = vadd.f32 %v2933_v29, %v7097_v46  ;;  %v7465_v29 = vld [vmem:[#allocation10_spill] sm:$0xff] }
 0x1cb   : > { %v2306_v15 = vpop.f32.mrf.mxu0  ;;  %v2935_v4 = vpop.f32.mrf.mxu1 }
 0x1cc   : > { %v7177_v59 = vadd.f32 %v2935_v4, %v7103_v48 }
 0x1cd   : > { %v2309_v49 = vpop.f32.mrf.mxu0  ;;  %v2939_v57 = vpop.f32.mrf.mxu1 }
 0x1ce   : > { %v2388_v1 = vadd.f32 %v2309_v49, %v7462_v2  ;;  %v7181_v11 = vadd.f32 %v2939_v57, %v7110_v12  ;;  %v7464_v12 = vld [vmem:[#allocation9_spill] sm:$0xff] }
 0x1cf   : > { %v2311_v26 = vpop.f32.mrf.mxu0  ;;  %v2941_v52 = vpop.f32.mrf.mxu1 }
 0x1d0   : > { %v7184_v58 = vadd.f32 %v2941_v52, %v7117_v60 }
 0x1d1   : > { %v2312_v13 = vpop.f32.mrf.mxu0  ;;  %v2943_v46 = vpop.f32.mrf.mxu1 }
 0x1d2   : > { %v2393_v39 = vadd.f32 %v2312_v13, %v7463_v27  ;;  %v7188_v17 = vadd.f32 %v2943_v46, %v7124_v40 }
 0x1d3   : > { %v2314_v48 = vpop.f32.mrf.mxu0  ;;  %v2945_v9 = vpop.f32.mrf.mxu1 }
 0x1d4   : > { %v7190_v8 = vadd.f32 %v2945_v9, %v2390_v50 }
 0x1d5   : > { %v2317_v22 = vpop.f32.mrf.mxu0  ;;  %v2949_v31 = vpop.f32.mrf.mxu1 }
 0x1d6   : > { %v2398_v23 = vadd.f32 %v2317_v22, %v7464_v12  ;;  %v7193_v7 = vadd.f32 %v2949_v31, %v2394_v33 }
 0x1d7   : > { %v2319_v30 = vpop.f32.mrf.mxu0  ;;  %v2951_v60 = vpop.f32.mrf.mxu1 }
 0x1d8   : > { %v7195_v18 = vadd.f32 %v2951_v60, %v2395_v38 }
 0x1d9   : > { %v2320_v41 = vpop.f32.mrf.mxu0  ;;  %v2953_v56 = vpop.f32.mrf.mxu1 }
 0x1da   : > { %v2403_v42 = vadd.f32 %v2320_v41, %v7465_v29  ;;  %v7198_v40 = vadd.f32 %v2953_v56, %v2399_v47 }
 0x1db   : > { %v2955_v15 = vpop.f32.mrf.mxu1  ;;  %v2322_v4 = vpop.f32.mrf.mxu0 }
 0x1dc   : > { %v7200_v50 = vadd.f32 %v2955_v15, %v2400_v21 }
 0x1ed   : > { %v2992_v49 = vpop.f32.mrf.mxu0  ;;  %v3065_v57 = vpop.f32.mrf.mxu1 }
 0x1ee   : > { %v7202_v2 = vadd.f32 %v3065_v57, %v2368_v35 }
 0x1ef   : > { %v2994_v33 = vpop.f32.mrf.mxu0  ;;  %v3067_v26 = vpop.f32.mrf.mxu1 }
 0x1f0   : > { %7466 = vst [vmem:[#allocation4_spill] sm:$0xff] %v7202_v2 }
 0x1f1   : > { %v2996_v52 = vpop.f32.mrf.mxu0  ;;  %v3068_v13 = vpop.f32.mrf.mxu1 }
 0x1f2   : > { %v7204_v38 = vadd.f32 %v3068_v13, %v2373_v25 }
 0x1f3   : > { %v2998_v46 = vpop.f32.mrf.mxu0  ;;  %v3070_v27 = vpop.f32.mrf.mxu1 }
 0x1f4   : > { %7467 = vst [vmem:[#allocation5_spill] sm:$0xff] %v7204_v38  ;;  %v3143_v38 = vadd.f32 %v2996_v52, %v7068_v43 }
 0x1f5   : > { %v3002_v48 = vpop.f32.mrf.mxu0  ;;  %v3073_v9 = vpop.f32.mrf.mxu1 }
 0x1f6   : > { %v7206_v47 = vadd.f32 %v3073_v9, %v2378_v24 }
 0x1f7   : > { %v3004_v22 = vpop.f32.mrf.mxu0  ;;  %v3075_v31 = vpop.f32.mrf.mxu1 }
 0x1f8   : > { %7468 = vst [vmem:[#allocation6_spill] sm:$0xff] %v7206_v47  ;;  %v7253_v2 = vadd.f32 %v3004_v22, %v7090_v44 }
 0x1f9   : > { %v3006_v21 = vpop.f32.mrf.mxu0  ;;  %v3076_v12 = vpop.f32.mrf.mxu1 }
 0x1fa   : > { %v7208_v30 = vadd.f32 %v3076_v12, %v2383_v61 }
 0x1fb   : > { %v3008_v35 = vpop.f32.mrf.mxu0  ;;  %v3078_v60 = vpop.f32.mrf.mxu1 }
 0x1fc   : > { %7469 = vst [vmem:[#allocation7_spill] sm:$0xff] %v7208_v30 }
 0x1fd   : > { %v3081_v41 = vpop.f32.mrf.mxu1  ;;  %v3012_v29 = vpop.f32.mrf.mxu0 }
 0x1fe   : > { %v7210_v56 = vadd.f32 %v3081_v41, %v2388_v1  ;;  %v4031_v41 = vlaneseq  ;;  %v7264_v43 = vadd.f32 %v3012_v29, %v7112_v20 }
 0x1ff   : > { %v3083_v25 = vpop.f32.mrf.mxu1  ;;  %v3014_v57 = vpop.f32.mrf.mxu0 }
 0x200   : > { %7470 = vst [vmem:[#allocation8_spill] sm:$0xff] %v7210_v56  ;;  %v3148_v56 = vadd.f32 %v3002_v48, %v7083_v34 }
 0x201   : > { %v3084_v15 = vpop.f32.mrf.mxu1  ;;  %v3016_v27 = vpop.f32.mrf.mxu0 }
 0x202   : > { %v7212_v4 = vadd.f32 %v3084_v15, %v2393_v39  ;;  %v7220_v39 = vshrl.u32 %v4031_v41, 7  ;;  %v7270_v34 = vadd.f32 %v3016_v27, %v7126_v14 }
 0x203   : > { %v3086_v24 = vpop.f32.mrf.mxu1  ;;  %v3018_v12 = vpop.f32.mrf.mxu0 }
 0x204   : > { %7471 = vst [vmem:[#allocation9_spill] sm:$0xff] %v7212_v4  ;;  %7474 = vst [vmem:[#allocation12_spill] sm:$0xff] %v7220_v39  ;;  %v4041_v15 = vsub.s32 2, %v7220_v39  ;;  %v4037_v24 = vsub.s32 1, %v7220_v39  ;;  %v7273_v44 = vadd.f32 %v3018_v12, %v7131_v36 }
 0x205   : > { %v3089_v26 = vpop.f32.mrf.mxu1  ;;  %v3022_v1 = vpop.f32.mrf.mxu0 }
 0x206   : > { %v7214_v13 = vadd.f32 %v3089_v26, %v2398_v23  ;;  %v4033_v23 = vsub.s32 0, %v7220_v39  ;;  %v4045_v26 = vsub.s32 3, %v7220_v39  ;;  %v7279_v20 = vadd.f32 %v3022_v1, %v7136_v54 }
 0x207   : > { %v3091_v9 = vpop.f32.mrf.mxu1  ;;  %v3024_v30 = vpop.f32.mrf.mxu0 }
 0x208   : > { %7472 = vst [vmem:[#allocation10_spill] sm:$0xff] %v7214_v13  ;;  %v3139_v13 = vadd.f32 %v2994_v33, %v7059_v63  ;;  %v7259_v63 = vadd.f32 %v3008_v35, %v7105_v55 }
 0x209   : > { %v3092_v61 = vpop.f32.mrf.mxu1  ;;  %v3026_v25 = vpop.f32.mrf.mxu0 }
 0x20a   : > { %v7216_v31 = vadd.f32 %v3092_v61, %v2403_v42  ;;  %v7227_v42 = vld [vmem:[%s7444_s1] sm:$0x1f]  ;;  %v7285_v14 = vadd.f32 %v3026_v25, %v7146_v0 }
 0x20b   : > { %v3094_v60 = vpop.f32.mrf.mxu1  ;;  %v3028_v9 = vpop.f32.mrf.mxu0  ;;  %v7234_v61 = vrot.slane %v7227_v42, %v4033_v23  ;;  %v7239_v41 = vrot.slane %v7227_v42, %v4041_v15  ;;  %v7244_v47 = vrot.slane %v7227_v42, %v4037_v24  ;;  %v7247_v4 = vrot.slane %v7227_v42, %v4045_v26 }
 0x20c   : > { %7473 = vst [vmem:[#allocation11_spill] sm:$0xff] %v7216_v31  ;;  %v7236_v60 = vstv %s3988_s2  ;;  %v3138_v31 = vadd.f32 %v2992_v49, %v7048_v10  ;;  %v3144_v23 = vadd.f32 %v2998_v46, %v7074_v32  ;;  %v7256_v10 = vadd.f32 %v3006_v21, %v7099_v19 }
 0x20d   : > { %v7267_v32 = vadd.f32 %v3014_v57, %v7119_v45  ;;  %v7282_v45 = vadd.f32 %v3024_v30, %v7141_v16  ;;  %v7288_v36 = vadd.f32 %v3028_v9, %v7149_v3 }
 0x21d   : > { %v3691_v15 = vpop.f32.mrf.mxu0  ;;  %v3764_v39 = vpop.f32.mrf.mxu1 }
 0x21e   : > { %v3908_v49 = vadd.f32 %v3691_v15, %v7153_v5  ;;  %v3910_v33 = vadd.f32 %v3764_v39, %v3138_v31 }
 0x21f   : > { %v3693_v19 = vpop.f32.mrf.mxu0  ;;  %v3766_v52 = vpop.f32.mrf.mxu1 }
 0x220   : > { %v4056_v55 = vadd.f32 %v7234_v61, %v3908_v49  ;;  %v4058_v46 = vadd.f32 %v7239_v41, %v3910_v33  ;;  %v3909_v5 = vadd.f32 %v3693_v19, %v7156_v6  ;;  %v3911_v48 = vadd.f32 %v3766_v52, %v3139_v13 }
 0x221   : > { %v3695_v22 = vpop.f32.mrf.mxu0  ;;  %v3768_v21 = vpop.f32.mrf.mxu1 }
 0x222   : > { %vm4096_vm1 = vcmp.gt.f32.partialorder %v4056_v55, 0.0  ;;  %v4137_v54 = vmul.f32 %v7236_v60, %v4056_v55  ;;  %vm4098_vm2 = vcmp.gt.f32.partialorder %v4058_v46, 0.0  ;;  %v4139_v16 = vmul.f32 %v7236_v60, %v4058_v46 }
 0x223   : > { %v4057_v0 = vadd.f32 %v7244_v47, %v3909_v5  ;;  %v4059_v3 = vadd.f32 %v7247_v4, %v3911_v48  ;;  %v3913_v6 = vadd.f32 %v3695_v22, %v7160_v62  ;;  %v3915_v30 = vadd.f32 %v3768_v21, %v3143_v38  ;;  %v3697_v35 = vpop.f32.mrf.mxu0  ;;  %v3770_v29 = vpop.f32.mrf.mxu1 }
 0x224   : > { %v4177_v57 = vsel %vm4096_vm1, %v4056_v55, %v4137_v54  ;;  %v4179_v13 = vsel %vm4098_vm2, %v4058_v46, %v4139_v16  ;;  %v3914_v27 = vadd.f32 %v3697_v35, %v7163_v51  ;;  %v3916_v31 = vadd.f32 %v3770_v29, %v3144_v23 }
 0x225   : > { %4259 = vst [vmem:[%s7293_s25] sm:$0xff] %v4177_v57  ;;  %4291 = vst [vmem:[%s7293_s25 + $0x40] sm:$0xff] %v4179_v13  ;;  %vm4097_vm3 = vcmp.gt.f32.partialorder %v4057_v0, 0.0  ;;  %v4138_v12 = vmul.f32 %v7236_v60, %v4057_v0  ;;  %vm4099_vm4 = vcmp.gt.f32.partialorder %v4059_v3, 0.0  ;;  %v4140_v1 = vmul.f32 %v7236_v60, %v4059_v3  ;;  %v3701_v39 = vpop.f32.mrf.mxu0  ;;  %v3774_v62 = vpop.f32.mrf.mxu1 }
 0x226   : > { %v4061_v38 = vadd.f32 %v7234_v61, %v3913_v6  ;;  %v4063_v25 = vadd.f32 %v7239_v41, %v3915_v30  ;;  %v4062_v24 = vadd.f32 %v7244_v47, %v3914_v27  ;;  %v4064_v51 = vadd.f32 %v7247_v4, %v3916_v31 }
 0x227   : > { %v4178_v26 = vsel %vm4097_vm3, %v4057_v0, %v4138_v12  ;;  %v4180_v9 = vsel %vm4099_vm4, %v4059_v3, %v4140_v1  ;;  %v3918_v23 = vadd.f32 %v3701_v39, %v7167_v37  ;;  %v3920_v15 = vadd.f32 %v3774_v62, %v3148_v56  ;;  %v3703_v49 = vpop.f32.mrf.mxu0  ;;  %v3776_v33 = vpop.f32.mrf.mxu1 }
 0x228   : > { %4275 = vst [vmem:[%s7293_s25 + $0x20] sm:$0xff] %v4178_v26  ;;  %4307 = vst [vmem:[%s7293_s25 + $0x60] sm:$0xff] %v4180_v9  ;;  %vm4101_vm5 = vcmp.gt.f32.partialorder %v4061_v38, 0.0  ;;  %v4142_v19 = vmul.f32 %v7236_v60, %v4061_v38  ;;  %vm4103_vm6 = vcmp.gt.f32.partialorder %v4063_v25, 0.0  ;;  %v4144_v52 = vmul.f32 %v7236_v60, %v4063_v25 }
 0x229   : > { %vm4102_vm7 = vcmp.gt.f32.partialorder %v4062_v24, 0.0  ;;  %v4143_v55 = vmul.f32 %v7236_v60, %v4062_v24  ;;  %vm4104_vm8 = vcmp.gt.f32.partialorder %v4064_v51, 0.0  ;;  %v4145_v37 = vmul.f32 %v7236_v60, %v4064_v51  ;;  %v3705_v56 = vpop.f32.mrf.mxu0  ;;  %v3778_v46 = vpop.f32.mrf.mxu1 }
 0x22a   : > { %v4182_v5 = vsel %vm4101_vm5, %v4061_v38, %v4142_v19  ;;  %v4184_v48 = vsel %vm4103_vm6, %v4063_v25, %v4144_v52  ;;  %v4066_v22 = vadd.f32 %v7234_v61, %v3918_v23  ;;  %v4068_v21 = vadd.f32 %v7239_v41, %v3920_v15 }
 0x22b   : > { %4260 = vst [vmem:[%s7293_s25 + $0xa0] sm:$0xff] %v4182_v5  ;;  %4292 = vst [vmem:[%s7293_s25 + $0xe0] sm:$0xff] %v4184_v48  ;;  %v4183_v54 = vsel %vm4102_vm7, %v4062_v24, %v4143_v55  ;;  %v4185_v16 = vsel %vm4104_vm8, %v4064_v51, %v4145_v37  ;;  %v3919_v0 = vadd.f32 %v3703_v49, %v7170_v28  ;;  %v3707_v6 = vpop.f32.mrf.mxu0  ;;  %v3780_v30 = vpop.f32.mrf.mxu1 }
 0x22c   : > { %v3921_v3 = vadd.f32 %v3776_v33, %v7253_v2  ;;  %4276 = vst [vmem:[%s7293_s25 + $0xc0] sm:$0xff] %v4183_v54  ;;  %4308 = vst [vmem:[%s7293_s25 + $0x100] sm:$0xff] %v4185_v16  ;;  %vm4106_vm9 = vcmp.gt.f32.partialorder %v4066_v22, 0.0  ;;  %v4147_v35 = vmul.f32 %v7236_v60, %v4066_v22  ;;  %vm4108_vm10 = vcmp.gt.f32.partialorder %v4068_v21, 0.0 }
 0x22d   : > { %v4149_v29 = vmul.f32 %v7236_v60, %v4068_v21  ;;  %v4067_v57 = vadd.f32 %v7244_v47, %v3919_v0  ;;  %v3923_v28 = vadd.f32 %v3705_v56, %v7174_v53  ;;  %v3925_v2 = vadd.f32 %v3778_v46, %v7256_v10  ;;  %v3711_v27 = vpop.f32.mrf.mxu0  ;;  %v3784_v31 = vpop.f32.mrf.mxu1 }
 0x22e   : > { %v4069_v13 = vadd.f32 %v7247_v4, %v3921_v3  ;;  %v4187_v12 = vsel %vm4106_vm9, %v4066_v22, %v4147_v35  ;;  %v3924_v39 = vadd.f32 %v3707_v6, %v7177_v59  ;;  %v3926_v62 = vadd.f32 %v3780_v30, %v7259_v63 }
 0x22f   : > { %v4189_v1 = vsel %vm4108_vm10, %v4068_v21, %v4149_v29  ;;  %4263 = vst [vmem:[%s7293_s25 + $0x8] sm:$0xff] %v4187_v12  ;;  %vm4107_vm11 = vcmp.gt.f32.partialorder %v4067_v57, 0.0  ;;  %v4148_v38 = vmul.f32 %v7236_v60, %v4067_v57  ;;  %v3713_v25 = vpop.f32.mrf.mxu0  ;;  %v3786_v10 = vpop.f32.mrf.mxu1  ;;  %v4071_v24 = vadd.f32 %v7234_v61, %v3923_v28 }
 0x230   : > { %4295 = vst [vmem:[%s7293_s25 + $0x48] sm:$0xff] %v4189_v1  ;;  %vm4109_vm12 = vcmp.gt.f32.partialorder %v4069_v13, 0.0  ;;  %v4150_v53 = vmul.f32 %v7236_v60, %v4069_v13  ;;  %v4073_v51 = vadd.f32 %v7239_v41, %v3925_v2  ;;  %v4072_v59 = vadd.f32 %v7244_v47, %v3924_v39 }
 0x231   : > { %v4074_v63 = vadd.f32 %v7247_v4, %v3926_v62  ;;  %v4188_v26 = vsel %vm4107_vm11, %v4067_v57, %v4148_v38  ;;  %v3928_v23 = vadd.f32 %v3711_v27, %v7181_v11  ;;  %v3930_v15 = vadd.f32 %v3784_v31, %v7264_v43  ;;  %v3715_v49 = vpop.f32.mrf.mxu0  ;;  %v3788_v33 = vpop.f32.mrf.mxu1 }
 0x232   : > { %v4190_v9 = vsel %vm4109_vm12, %v4069_v13, %v4150_v53  ;;  %4279 = vst [vmem:[%s7293_s25 + $0x28] sm:$0xff] %v4188_v26  ;;  %vm4111_vm13 = vcmp.gt.f32.partialorder %v4071_v24, 0.0  ;;  %v4152_v19 = vmul.f32 %v7236_v60, %v4071_v24  ;;  %vm4113_vm14 = vcmp.gt.f32.partialorder %v4073_v51, 0.0 }
 0x233   : > { %4311 = vst [vmem:[%s7293_s25 + $0x68] sm:$0xff] %v4190_v9  ;;  %v4154_v52 = vmul.f32 %v7236_v60, %v4073_v51  ;;  %vm4112_vm15 = vcmp.gt.f32.partialorder %v4072_v59, 0.0  ;;  %v4153_v55 = vmul.f32 %v7236_v60, %v4072_v59  ;;  %vm4114_vm0 = vcmp.gt.f32.partialorder %v4074_v63, 0.0  ;;  %v3717_v43 = vpop.f32.mrf.mxu0  ;;  %v3790_v37 = vpop.f32.mrf.mxu1 }
 0x234   : > { %v4155_v11 = vmul.f32 %v7236_v60, %v4074_v63  ;;  %v4192_v56 = vsel %vm4111_vm13, %v4071_v24, %v4152_v19  ;;  %v4076_v5 = vadd.f32 %v7234_v61, %v3928_v23  ;;  %v4078_v48 = vadd.f32 %v7239_v41, %v3930_v15 }
 0x235   : > { %v4194_v46 = vsel %vm4113_vm14, %v4073_v51, %v4154_v52  ;;  %4264 = vst [vmem:[%s7293_s25 + $0xa8] sm:$0xff] %v4192_v56  ;;  %v4193_v22 = vsel %vm4112_vm15, %v4072_v59, %v4153_v55  ;;  %v3929_v54 = vadd.f32 %v3713_v25, %v7184_v58  ;;  %v3931_v16 = vadd.f32 %v3786_v10, %v7267_v32  ;;  %v3721_v0 = vpop.f32.mrf.mxu0  ;;  %v3794_v3 = vpop.f32.mrf.mxu1 }
 0x236   : > { %4296 = vst [vmem:[%s7293_s25 + $0xe8] sm:$0xff] %v4194_v46  ;;  %v4195_v21 = vsel %vm4114_vm0, %v4074_v63, %v4155_v11  ;;  %4280 = vst [vmem:[%s7293_s25 + $0xc8] sm:$0xff] %v4193_v22  ;;  %vm4116_vm1 = vcmp.gt.f32.partialorder %v4076_v5, 0.0  ;;  %v4157_v6 = vmul.f32 %v7236_v60, %v4076_v5  ;;  %vm4118_vm2 = vcmp.gt.f32.partialorder %v4078_v48, 0.0 }
 0x237   : > { %4312 = vst [vmem:[%s7293_s25 + $0x108] sm:$0xff] %v4195_v21  ;;  %v4159_v30 = vmul.f32 %v7236_v60, %v4078_v48  ;;  %v4077_v35 = vadd.f32 %v7244_v47, %v3929_v54  ;;  %v4079_v29 = vadd.f32 %v7247_v4, %v3931_v16  ;;  %v3933_v58 = vadd.f32 %v3715_v49, %v7188_v17  ;;  %v3723_v57 = vpop.f32.mrf.mxu0  ;;  %v3796_v13 = vpop.f32.mrf.mxu1 }
 0x238   : > { %v3935_v32 = vadd.f32 %v3788_v33, %v7270_v34  ;;  %v4197_v28 = vsel %vm4116_vm1, %v4076_v5, %v4157_v6  ;;  %v3934_v27 = vadd.f32 %v3717_v43, %v7190_v8  ;;  %v3936_v31 = vadd.f32 %v3790_v37, %v7273_v44  ;;  %v7475_v6 = vld [vmem:[#allocation12_spill] sm:$0xff] }
 0x239   : > { %v4199_v2 = vsel %vm4118_vm2, %v4078_v48, %v4159_v30  ;;  %4267 = vst [vmem:[%s7293_s25 + $0x10] sm:$0xff] %v4197_v28  ;;  %vm4117_vm3 = vcmp.gt.f32.partialorder %v4077_v35, 0.0  ;;  %v4158_v12 = vmul.f32 %v7236_v60, %v4077_v35  ;;  %vm4119_vm4 = vcmp.gt.f32.partialorder %v4079_v29, 0.0  ;;  %v3725_v25 = vpop.f32.mrf.mxu0  ;;  %v3798_v10 = vpop.f32.mrf.mxu1 }
 0x23a   : > { %4299 = vst [vmem:[%s7293_s25 + $0x50] sm:$0xff] %v4199_v2  ;;  %v4160_v17 = vmul.f32 %v7236_v60, %v4079_v29  ;;  %v4081_v34 = vadd.f32 %v7234_v61, %v3933_v58  ;;  %v4083_v1 = vadd.f32 %v7239_v41, %v3935_v32  ;;  %v4082_v39 = vadd.f32 %v7244_v47, %v3934_v27  ;;  %v7477_v2 = vld [vmem:[#allocation8_spill] sm:$0xff] }
 0x23b   : > { %v4084_v8 = vadd.f32 %v7247_v4, %v3936_v31  ;;  %v4198_v62 = vsel %vm4117_vm3, %v4077_v35, %v4158_v12  ;;  %v3938_v38 = vadd.f32 %v3721_v0, %v7193_v7  ;;  %v3940_v53 = vadd.f32 %v3794_v3, %v7279_v20  ;;  %v3727_v19 = vpop.f32.mrf.mxu0  ;;  %v3800_v52 = vpop.f32.mrf.mxu1 }
 0x23c   : > { %v4200_v44 = vsel %vm4119_vm4, %v4079_v29, %v4160_v17  ;;  %4283 = vst [vmem:[%s7293_s25 + $0x30] sm:$0xff] %v4198_v62  ;;  %vm4121_vm5 = vcmp.gt.f32.partialorder %v4081_v34, 0.0  ;;  %v4162_v24 = vmul.f32 %v7236_v60, %v4081_v34  ;;  %vm4123_vm6 = vcmp.gt.f32.partialorder %v4083_v1, 0.0  ;;  %v7478_v62 = vld [vmem:[#allocation5_spill] sm:$0xff] }
 0x23d   : > { %4315 = vst [vmem:[%s7293_s25 + $0x70] sm:$0xff] %v4200_v44  ;;  %v4164_v51 = vmul.f32 %v7236_v60, %v4083_v1  ;;  %vm4122_vm7 = vcmp.gt.f32.partialorder %v4082_v39, 0.0  ;;  %v4163_v59 = vmul.f32 %v7236_v60, %v4082_v39  ;;  %vm4124_vm8 = vcmp.gt.f32.partialorder %v4084_v8, 0.0 }
 0x23e   : > { %v4165_v7 = vmul.f32 %v7236_v60, %v4084_v8  ;;  %v4202_v20 = vsel %vm4121_vm5, %v4081_v34, %v4162_v24  ;;  %v4086_v26 = vadd.f32 %v7234_v61, %v3938_v38  ;;  %v4088_v9 = vadd.f32 %v7239_v41, %v3940_v53  ;;  %v7479_v38 = vld [vmem:[#allocation9_spill] sm:$0xff] }
 0x23f   : > { %v4204_v63 = vsel %vm4123_vm6, %v4083_v1, %v4164_v51  ;;  %4268 = vst [vmem:[%s7293_s25 + $0xb0] sm:$0xff] %v4202_v20  ;;  %v4203_v23 = vsel %vm4122_vm7, %v4082_v39, %v4163_v59  ;;  %v3939_v49 = vadd.f32 %v3723_v57, %v7195_v18  ;;  %v3941_v33 = vadd.f32 %v3796_v13, %v7282_v45  ;;  %v7476_v13 = vld [vmem:[#allocation4_spill] sm:$0xff] }
 0x240   : > { %4300 = vst [vmem:[%s7293_s25 + $0xf0] sm:$0xff] %v4204_v63  ;;  %v4205_v15 = vsel %vm4124_vm8, %v4084_v8, %v4165_v7  ;;  %4284 = vst [vmem:[%s7293_s25 + $0xd0] sm:$0xff] %v4203_v23  ;;  %vm4126_vm9 = vcmp.gt.f32.partialorder %v4086_v26, 0.0  ;;  %v4167_v55 = vmul.f32 %v7236_v60, %v4086_v26  ;;  %vm4128_vm10 = vcmp.gt.f32.partialorder %v4088_v9, 0.0  ;;  %v7481_v23 = vld [vmem:[#allocation10_spill] sm:$0xff] }
 0x241   : > { %4316 = vst [vmem:[%s7293_s25 + $0x110] sm:$0xff] %v4205_v15  ;;  %v4169_v11 = vmul.f32 %v7236_v60, %v4088_v9  ;;  %v4087_v43 = vadd.f32 %v7244_v47, %v3939_v49  ;;  %v4089_v37 = vadd.f32 %v7247_v4, %v3941_v33  ;;  %v3943_v18 = vadd.f32 %v3725_v25, %v7198_v40 }
 0x242   : > { %v3945_v45 = vadd.f32 %v3798_v10, %v7285_v14  ;;  %v4207_v56 = vsel %vm4126_vm9, %v4086_v26, %v4167_v55  ;;  %v3944_v5 = vadd.f32 %v3727_v19, %v7200_v50  ;;  %v3946_v48 = vadd.f32 %v3800_v52, %v7288_v36  ;;  %v7480_v26 = vld [vmem:[#allocation6_spill] sm:$0xff] }
 0x243   : > { %v4209_v46 = vsel %vm4128_vm10, %v4088_v9, %v4169_v11  ;;  %4271 = vst [vmem:[%s7293_s25 + $0x18] sm:$0xff] %v4207_v56  ;;  %vm4127_vm11 = vcmp.gt.f32.partialorder %v4087_v43, 0.0  ;;  %v4168_v22 = vmul.f32 %v7236_v60, %v4087_v43  ;;  %vm4129_vm12 = vcmp.gt.f32.partialorder %v4089_v37, 0.0 }
 0x244   : > { %4303 = vst [vmem:[%s7293_s25 + $0x58] sm:$0xff] %v4209_v46  ;;  %v4170_v21 = vmul.f32 %v7236_v60, %v4089_v37  ;;  %v4091_v40 = vadd.f32 %v7234_v61, %v3943_v18  ;;  %v4093_v14 = vadd.f32 %v7239_v41, %v3945_v45  ;;  %v4092_v54 = vadd.f32 %v7244_v47, %v3944_v5  ;;  %v7482_v5 = vld [vmem:[#allocation7_spill] sm:$0xff] }
 0x245   : > { %v4094_v16 = vadd.f32 %v7247_v4, %v3946_v48  ;;  %v4208_v50 = vsel %vm4127_vm11, %v4087_v43, %v4168_v22  ;;  %v4049_v30 = vsub.s32 4, %v7475_v6  ;;  %v7483_v22 = vld [vmem:[#allocation11_spill] sm:$0xff] }
 0x246   : > { %v4210_v36 = vsel %vm4129_vm12, %v4089_v37, %v4170_v21  ;;  %4287 = vst [vmem:[%s7293_s25 + $0x38] sm:$0xff] %v4208_v50  ;;  %vm4131_vm13 = vcmp.gt.f32.partialorder %v4091_v40, 0.0  ;;  %v4172_v0 = vmul.f32 %v7236_v60, %v4091_v40  ;;  %vm4133_vm14 = vcmp.gt.f32.partialorder %v4093_v14, 0.0 }
 0x247   : > { %4319 = vst [vmem:[%s7293_s25 + $0x78] sm:$0xff] %v4210_v36  ;;  %v4174_v61 = vmul.f32 %v7236_v60, %v4093_v14  ;;  %vm4132_vm15 = vcmp.gt.f32.partialorder %v4092_v54, 0.0  ;;  %v4173_v41 = vmul.f32 %v7236_v60, %v4092_v54  ;;  %vm4134_vm0 = vcmp.gt.f32.partialorder %v4094_v16, 0.0 }
 0x248   : > { %v4175_v47 = vmul.f32 %v7236_v60, %v4094_v16  ;;  %v4212_v4 = vsel %vm4131_vm13, %v4091_v40, %v4172_v0  ;;  %v4050_v58 = vrot.slane %v7227_v42, %v4049_v30 }
 0x249   : > { %v4214_v3 = vsel %vm4133_vm14, %v4093_v14, %v4174_v61  ;;  %4272 = vst [vmem:[%s7293_s25 + $0xb8] sm:$0xff] %v4212_v4  ;;  %v4213_v35 = vsel %vm4132_vm15, %v4092_v54, %v4173_v41 }
 0x24a   : > { %4304 = vst [vmem:[%s7293_s25 + $0xf8] sm:$0xff] %v4214_v3  ;;  %v4215_v29 = vsel %vm4134_vm0, %v4094_v16, %v4175_v47  ;;  %4288 = vst [vmem:[%s7293_s25 + $0xd8] sm:$0xff] %v4213_v35 }
 0x24b   : > { %4320 = vst [vmem:[%s7293_s25 + $0x118] sm:$0xff] %v4215_v29 }
 0x24d   : > { %v3837_v32 = vpop.f32.mrf.mxu0  ;;  %v3853_v57 = vpop.f32.mrf.mxu1 }
 0x24e   : > { %v3912_v28 = vadd.f32 %v3837_v32, %v7476_v13  ;;  %v3932_v27 = vadd.f32 %v3853_v57, %v7477_v2 }
 0x24f   : > { %v3839_v31 = vpop.f32.mrf.mxu0  ;;  %v3855_v12 = vpop.f32.mrf.mxu1 }
 0x250   : > { %v4060_v17 = vadd.f32 %v4050_v58, %v3912_v28  ;;  %v4080_v34 = vadd.f32 %v4050_v58, %v3932_v27 }
 0x251   : > { %v3840_v1 = vpop.f32.mrf.mxu0  ;;  %v3856_v39 = vpop.f32.mrf.mxu1 }
 0x252   : > { %vm4100_vm1 = vcmp.gt.f32.partialorder %v4060_v17, 0.0  ;;  %v4141_v8 = vmul.f32 %v7236_v60, %v4060_v17  ;;  %vm4120_vm2 = vcmp.gt.f32.partialorder %v4080_v34, 0.0  ;;  %v4161_v42 = vmul.f32 %v7236_v60, %v4080_v34 }
 0x253   : > { %v3917_v44 = vadd.f32 %v3840_v1, %v7478_v62  ;;  %v3937_v53 = vadd.f32 %v3856_v39, %v7479_v38  ;;  %v3842_v25 = vpop.f32.mrf.mxu0  ;;  %v3858_v10 = vpop.f32.mrf.mxu1 }
 0x254   : > { %v4181_v24 = vsel %vm4100_vm1, %v4060_v17, %v4141_v8  ;;  %v4201_v51 = vsel %vm4120_vm2, %v4080_v34, %v4161_v42 }
 0x255   : > { %4323 = vst [vmem:[%s7293_s25 + $0x80] sm:$0xff] %v4181_v24  ;;  %4331 = vst [vmem:[%s7293_s25 + $0x90] sm:$0xff] %v4201_v51  ;;  %v4065_v59 = vadd.f32 %v4050_v58, %v3917_v44  ;;  %v4085_v7 = vadd.f32 %v4050_v58, %v3937_v53  ;;  %v3845_v20 = vpop.f32.mrf.mxu0  ;;  %v3861_v63 = vpop.f32.mrf.mxu1 }
 0x256   : > { %v3922_v9 = vadd.f32 %v3845_v20, %v7480_v26  ;;  %v3942_v15 = vadd.f32 %v3861_v63, %v7481_v23 }
 0x257   : > { %vm4105_vm3 = vcmp.gt.f32.partialorder %v4065_v59, 0.0  ;;  %v4146_v49 = vmul.f32 %v7236_v60, %v4065_v59  ;;  %vm4125_vm4 = vcmp.gt.f32.partialorder %v4085_v7, 0.0  ;;  %v4166_v33 = vmul.f32 %v7236_v60, %v4085_v7  ;;  %v3847_v19 = vpop.f32.mrf.mxu0  ;;  %v3863_v52 = vpop.f32.mrf.mxu1 }
 0x258   : > { %v4070_v55 = vadd.f32 %v4050_v58, %v3922_v9  ;;  %v4090_v11 = vadd.f32 %v4050_v58, %v3942_v15 }
 0x259   : > { %v4186_v43 = vsel %vm4105_vm3, %v4065_v59, %v4146_v49  ;;  %v4206_v37 = vsel %vm4125_vm4, %v4085_v7, %v4166_v33  ;;  %v3848_v18 = vpop.f32.mrf.mxu0  ;;  %v3864_v45 = vpop.f32.mrf.mxu1 }
 0x25a   : > { %4324 = vst [vmem:[%s7293_s25 + $0x120] sm:$0xff] %v4186_v43  ;;  %4332 = vst [vmem:[%s7293_s25 + $0x130] sm:$0xff] %v4206_v37  ;;  %vm4110_vm5 = vcmp.gt.f32.partialorder %v4070_v55, 0.0  ;;  %v4151_v56 = vmul.f32 %v7236_v60, %v4070_v55  ;;  %vm4130_vm6 = vcmp.gt.f32.partialorder %v4090_v11, 0.0  ;;  %v4171_v46 = vmul.f32 %v7236_v60, %v4090_v11 }
 0x25b   : > { %v3927_v48 = vadd.f32 %v3848_v18, %v7482_v5  ;;  %v3947_v21 = vadd.f32 %v3864_v45, %v7483_v22  ;;  %v3850_v40 = vpop.f32.mrf.mxu0  ;;  %v3866_v14 = vpop.f32.mrf.mxu1 }
 0x25c   : > { %v4191_v54 = vsel %vm4110_vm5, %v4070_v55, %v4151_v56  ;;  %v4211_v16 = vsel %vm4130_vm6, %v4090_v11, %v4171_v46 }
 0x25d   : > { %4327 = vst [vmem:[%s7293_s25 + $0x88] sm:$0xff] %v4191_v54  ;;  %4335 = vst [vmem:[%s7293_s25 + $0x98] sm:$0xff] %v4211_v16  ;;  %v4075_v50 = vadd.f32 %v4050_v58, %v3927_v48  ;;  %v4095_v36 = vadd.f32 %v4050_v58, %v3947_v21 }
 0x25f   : > { %vm4115_vm7 = vcmp.gt.f32.partialorder %v4075_v50, 0.0  ;;  %v4156_v0 = vmul.f32 %v7236_v60, %v4075_v50  ;;  %vm4135_vm8 = vcmp.gt.f32.partialorder %v4095_v36, 0.0  ;;  %v4176_v61 = vmul.f32 %v7236_v60, %v4095_v36 }
 0x261   : > { %v4196_v41 = vsel %vm4115_vm7, %v4075_v50, %v4156_v0  ;;  %v4216_v47 = vsel %vm4135_vm8, %v4095_v36, %v4176_v61 }
 0x262   : > { %4328 = vst [vmem:[%s7293_s25 + $0x128] sm:$0xff] %v4196_v41  ;;  %4336 = vst [vmem:[%s7293_s25 + $0x138] sm:$0xff] %v4216_v47 }
 0x263 PF: > { %s15_s17 = sadd.s32 1, %s5595_s17  }
 0x264   : > { %p12_p5 = scmp.ge.s32.totalorder %s15_s17, 4  }
 0x266   :  { %14 = sbr.rel (!%p12_p5) target bundleno = 2 (0x2), region = 70 }

</bundles_post_ra>
